<compile_context>
chip_gen: v6e
topology: v6e:2x2x1
jax: 0.10.0
libtpu: 0.0.40
codegen_flags: <defaults>
</compile_context>

<pallas_src>
import jax
import jax.numpy as jnp
from jax.experimental import pallas as pl
from jax.experimental.pallas import tpu as pltpu

D_IN = 784          # input features (unpadded; Mosaic pads K in-layout)
D_OUT = 10          # original logits width
D_OUT_PAD = 128     # lane-dense output width


def mlp_kernel(x_ref,
               w1_ref, b1_ref,
               w2_ref, b2_ref,
               w3_ref, b3_ref,
               w4_ref, b4_ref,
               w5_ref, b5_ref,
               o_ref):
    # Activations/weights are bf16; accumulation / bias / ReLU in f32.
    def layer(h_bf16, w_ref, b_ref, relu):
        y = jnp.dot(h_bf16, w_ref[...],
                    preferred_element_type=jnp.float32) + b_ref[...]
        if relu:
            y = jnp.maximum(y, 0.0)
        return y.astype(jnp.bfloat16)

    h = layer(x_ref[...], w1_ref, b1_ref, relu=True)
    h = layer(h, w2_ref, b2_ref, relu=True)
    h = layer(h, w3_ref, b3_ref, relu=True)
    h = layer(h, w4_ref, b4_ref, relu=True)
    o_ref[...] = layer(h, w5_ref, b5_ref, relu=False)   # bf16 (TB, 128)


def _pad2d(a, rows, cols):
    return jnp.pad(a, ((0, rows - a.shape[0]), (0, cols - a.shape[1])))


def prepare_params(params):
    """Cast weights to bf16; pad only the tiny tail layers lane-dense."""
    (w1, b1), (w2, b2), (w3, b3), (w4, b4), (w5, b5) = params
    w1p = w1.astype(jnp.bfloat16)                            # (784, 512)
    w2p = w2.astype(jnp.bfloat16)                            # (512, 256)
    w3p = w3.astype(jnp.bfloat16)                            # (256, 128)
    w4p = _pad2d(w4, 128, 128).astype(jnp.bfloat16)          # (128, 128)
    w5p = _pad2d(w5, 128, D_OUT_PAD).astype(jnp.bfloat16)    # (128, 128)
    b4p = _pad2d(b4, 1, 128)                                 # (1, 128) f32
    b5p = _pad2d(b5, 1, D_OUT_PAD)                           # (1, 128) f32
    return (w1p, b1, w2p, b2, w3p, b3, w4p, b4p, w5p, b5p)


def _choose_tb(B):
    """Batch (M) tile selection.

    * B <= 128: single minimally padded tile (bf16 sublane alignment = 16);
      avoids >100x wasted MXU work for small-batch inference.
    * Medium B: split into 2 tiles so both v7x TensorCores get work.
    * Large B: TB = 1024 amortizes the ~0.35us/grid-step overhead while the
      double-buffered working set stays ~5-6 MiB (fits v5e/v6e/v7x VMEM).
    """
    align = 16
    max_tb = 1024
    if B <= 128:
        return max(align, -(-B // align) * align)
    half = -(-B // 2)
    return min(max_tb, -(-half // align) * align)


def net_forward(x, params):
    """x: any shape with trailing dims multiplying to 784 (e.g. (B,1,28,28))."""
    x2d = x.reshape(-1, D_IN).astype(jnp.bfloat16)   # single HBM cast pass
    B = x2d.shape[0]
    TB = _choose_tb(B)
    n_tiles = pl.cdiv(B, TB)
    Bp = n_tiles * TB
    if Bp != B:
        x2d = jnp.pad(x2d, ((0, Bp - B), (0, 0)))    # batch-row pad only

    w1, b1, w2, b2, w3, b3, w4, b4, w5, b5 = prepare_params(params)

    def const_spec(a):
        # Full-array block, invariant across the batch grid -> stays in VMEM.
        return pl.BlockSpec(a.shape, lambda i: (0, 0))

    mac = D_IN * 512 + 512 * 256 + 256 * 128 + 128 * 128 + 128 * D_OUT_PAD
    weight_bytes = 2 * mac                                    # bf16 weights
    bias_bytes = 4 * (512 + 256 + 128 + 128 + D_OUT_PAD)      # f32 biases
    cost = pl.CostEstimate(
        flops=2 * Bp * mac,
        transcendentals=0,
        bytes_accessed=Bp * D_IN * 2 + weight_bytes + bias_bytes
                       + Bp * D_OUT_PAD * 2,
    )

    out = pl.pallas_call(
        mlp_kernel,
        out_shape=jax.ShapeDtypeStruct((Bp, D_OUT_PAD), jnp.bfloat16),
        grid_spec=pltpu.PrefetchScalarGridSpec(
            num_scalar_prefetch=0,
            grid=(n_tiles,),
            in_specs=[
                pl.BlockSpec((TB, D_IN), lambda i: (i, 0)),   # x tile
                const_spec(w1), const_spec(b1),
                const_spec(w2), const_spec(b2),
                const_spec(w3), const_spec(b3),
                const_spec(w4), const_spec(b4),
                const_spec(w5), const_spec(b5),
            ],
            out_specs=pl.BlockSpec((TB, D_OUT_PAD), lambda i: (i, 0)),
        ),
        compiler_params=pltpu.CompilerParams(
            dimension_semantics=("parallel",),
        ),
        cost_estimate=cost,
    )(x2d, w1, b1, w2, b2, w3, b3, w4, b4, w5, b5)

    return out[:B, :D_OUT].astype(jnp.float32)


def init_params(key):
    """Deterministic init matching PyTorch Linear shapes.

    PyTorch stores W as (out, in); we store the transpose (in, out) so the
    kernel computes x @ W. Biases kept 2D (1, out) for TPU-friendly layout.
    """
    sizes = [(784, 512), (512, 256), (256, 128), (128, 64), (64, 10)]
    params = []
    for i, (fan_in, fan_out) in enumerate(sizes):
        kw, kb, key = jax.random.split(jax.random.fold_in(key, i), 3)
        bound = 1.0 / jnp.sqrt(fan_in)
        w = jax.random.uniform(kw, (fan_in, fan_out), jnp.float32, -bound, bound)
        b = jax.random.uniform(kb, (1, fan_out), jnp.float32, -bound, bound)
        params.append((w, b))
    return params


def reference_forward(x, params):
    """Reference with the same bf16-matmul / f32-accumulate numerics."""
    h = x.reshape(-1, D_IN).astype(jnp.float32)
    for i, (w, b) in enumerate(params):
        h = jnp.dot(h.astype(jnp.bfloat16), w.astype(jnp.bfloat16),
                    preferred_element_type=jnp.float32) + b
        if i < len(params) - 1:
            h = jnp.maximum(h, 0.0)
    return h


if __name__ == "__main__":
    key = jax.random.PRNGKey(0)
    params = init_params(key)

    # Small MNIST-like input: batch=2, NCHW (2, 1, 28, 28).
    x = jax.random.normal(jax.random.fold_in(key, 999), (2, 1, 28, 28), jnp.float32)

    out = net_forward(x, params)
    out = jax.block_until_ready(out)

    ref = reference_forward(x, params)
    assert out.shape == (2, 10), out.shape
    assert jnp.allclose(out, ref, atol=1e-2, rtol=1e-2), (
        f"max abs err {jnp.max(jnp.abs(out - ref))}"
    )

    print("KERNEL_OK")
</pallas_src>

<mosaic_0001>
module attributes {stable_mosaic.version = 11 : i64} {
  func.func @mlp_kernel(%arg0: i32, %arg1: memref<16x784xbf16, #tpu.memory_space<vmem>>, %arg2: memref<784x512xbf16, #tpu.memory_space<vmem>>, %arg3: memref<1x512xf32, #tpu.memory_space<vmem>>, %arg4: memref<512x256xbf16, #tpu.memory_space<vmem>>, %arg5: memref<1x256xf32, #tpu.memory_space<vmem>>, %arg6: memref<256x128xbf16, #tpu.memory_space<vmem>>, %arg7: memref<1x128xf32, #tpu.memory_space<vmem>>, %arg8: memref<128x128xbf16, #tpu.memory_space<vmem>>, %arg9: memref<1x128xf32, #tpu.memory_space<vmem>>, %arg10: memref<128x128xbf16, #tpu.memory_space<vmem>>, %arg11: memref<1x128xf32, #tpu.memory_space<vmem>>, %arg12: memref<16x128xbf16, #tpu.memory_space<vmem>>) attributes {dimension_semantics = [#tpu.dimension_semantics<parallel>], iteration_bounds = array<i64: 1>, scalar_prefetch = 0 : i64, scratch_operands = 0 : i64, tpu.core_type = #tpu.core_type<tc>, window_params = [{transform_indices = @transform_0, window_bounds = array<i64: 16, 784>}, {pipeline_mode = #tpu.pipeline_mode<synchronous>, transform_indices = @transform_1, window_bounds = array<i64: 784, 512>}, {pipeline_mode = #tpu.pipeline_mode<synchronous>, transform_indices = @transform_2, window_bounds = array<i64: 1, 512>}, {pipeline_mode = #tpu.pipeline_mode<synchronous>, transform_indices = @transform_3, window_bounds = array<i64: 512, 256>}, {pipeline_mode = #tpu.pipeline_mode<synchronous>, transform_indices = @transform_4, window_bounds = array<i64: 1, 256>}, {pipeline_mode = #tpu.pipeline_mode<synchronous>, transform_indices = @transform_5, window_bounds = array<i64: 256, 128>}, {pipeline_mode = #tpu.pipeline_mode<synchronous>, transform_indices = @transform_6, window_bounds = array<i64: 1, 128>}, {pipeline_mode = #tpu.pipeline_mode<synchronous>, transform_indices = @transform_7, window_bounds = array<i64: 128, 128>}, {pipeline_mode = #tpu.pipeline_mode<synchronous>, transform_indices = @transform_8, window_bounds = array<i64: 1, 128>}, {pipeline_mode = #tpu.pipeline_mode<synchronous>, transform_indices = @transform_9, window_bounds = array<i64: 128, 128>}, {pipeline_mode = #tpu.pipeline_mode<synchronous>, transform_indices = @transform_10, window_bounds = array<i64: 1, 128>}, {transform_indices = @transform_11, window_bounds = array<i64: 16, 128>}]} {
    %c0 = arith.constant 0 : index
    %c0_0 = arith.constant 0 : index
    %0 = vector.load %arg1[%c0, %c0_0] : memref<16x784xbf16, #tpu.memory_space<vmem>>, vector<16x784xbf16>
    %c0_1 = arith.constant 0 : index
    %c0_2 = arith.constant 0 : index
    %1 = vector.load %arg2[%c0_1, %c0_2] : memref<784x512xbf16, #tpu.memory_space<vmem>>, vector<784x512xbf16>
    %cst = arith.constant dense<0.000000e+00> : vector<16x512xf32>
    %2 = tpu.matmul %0, %1, %cst {dimension_numbers = #tpu.dot_dimension_numbers<[1], [0], [0], [1], [0, 0, 1, 1], [], []>} : vector<16x784xbf16>, vector<784x512xbf16>, vector<16x512xf32> -> vector<16x512xf32>
    %c0_3 = arith.constant 0 : index
    %c0_4 = arith.constant 0 : index
    %3 = vector.load %arg3[%c0_3, %c0_4] : memref<1x512xf32, #tpu.memory_space<vmem>>, vector<1x512xf32>
    %4 = vector.broadcast %3 : vector<1x512xf32> to vector<16x512xf32>
    %5 = arith.addf %2, %4 : vector<16x512xf32>
    %cst_5 = arith.constant 0.000000e+00 : f32
    %6 = vector.broadcast %cst_5 : f32 to vector<16x512xf32>
    %7 = arith.maximumf %5, %6 : vector<16x512xf32>
    %8 = arith.truncf %7 : vector<16x512xf32> to vector<16x512xbf16>
    %c0_6 = arith.constant 0 : index
    %c0_7 = arith.constant 0 : index
    %9 = vector.load %arg4[%c0_6, %c0_7] : memref<512x256xbf16, #tpu.memory_space<vmem>>, vector<512x256xbf16>
    %cst_8 = arith.constant dense<0.000000e+00> : vector<16x256xf32>
    %10 = tpu.matmul %8, %9, %cst_8 {dimension_numbers = #tpu.dot_dimension_numbers<[1], [0], [0], [1], [0, 0, 1, 1], [], []>} : vector<16x512xbf16>, vector<512x256xbf16>, vector<16x256xf32> -> vector<16x256xf32>
    %c0_9 = arith.constant 0 : index
    %c0_10 = arith.constant 0 : index
    %11 = vector.load %arg5[%c0_9, %c0_10] : memref<1x256xf32, #tpu.memory_space<vmem>>, vector<1x256xf32>
    %12 = vector.broadcast %11 : vector<1x256xf32> to vector<16x256xf32>
    %13 = arith.addf %10, %12 : vector<16x256xf32>
    %cst_11 = arith.constant 0.000000e+00 : f32
    %14 = vector.broadcast %cst_11 : f32 to vector<16x256xf32>
    %15 = arith.maximumf %13, %14 : vector<16x256xf32>
    %16 = arith.truncf %15 : vector<16x256xf32> to vector<16x256xbf16>
    %c0_12 = arith.constant 0 : index
    %c0_13 = arith.constant 0 : index
    %17 = vector.load %arg6[%c0_12, %c0_13] : memref<256x128xbf16, #tpu.memory_space<vmem>>, vector<256x128xbf16>
    %cst_14 = arith.constant dense<0.000000e+00> : vector<16x128xf32>
    %18 = tpu.matmul %16, %17, %cst_14 {dimension_numbers = #tpu.dot_dimension_numbers<[1], [0], [0], [1], [0, 0, 1, 1], [], []>} : vector<16x256xbf16>, vector<256x128xbf16>, vector<16x128xf32> -> vector<16x128xf32>
    %c0_15 = arith.constant 0 : index
    %c0_16 = arith.constant 0 : index
    %19 = vector.load %arg7[%c0_15, %c0_16] : memref<1x128xf32, #tpu.memory_space<vmem>>, vector<1x128xf32>
    %20 = vector.broadcast %19 : vector<1x128xf32> to vector<16x128xf32>
    %21 = arith.addf %18, %20 : vector<16x128xf32>
    %cst_17 = arith.constant 0.000000e+00 : f32
    %22 = vector.broadcast %cst_17 : f32 to vector<16x128xf32>
    %23 = arith.maximumf %21, %22 : vector<16x128xf32>
    %24 = arith.truncf %23 : vector<16x128xf32> to vector<16x128xbf16>
    %c0_18 = arith.constant 0 : index
    %c0_19 = arith.constant 0 : index
    %25 = vector.load %arg8[%c0_18, %c0_19] : memref<128x128xbf16, #tpu.memory_space<vmem>>, vector<128x128xbf16>
    %cst_20 = arith.constant dense<0.000000e+00> : vector<16x128xf32>
    %26 = tpu.matmul %24, %25, %cst_20 {dimension_numbers = #tpu.dot_dimension_numbers<[1], [0], [0], [1], [0, 0, 1, 1], [], []>} : vector<16x128xbf16>, vector<128x128xbf16>, vector<16x128xf32> -> vector<16x128xf32>
    %c0_21 = arith.constant 0 : index
    %c0_22 = arith.constant 0 : index
    %27 = vector.load %arg9[%c0_21, %c0_22] : memref<1x128xf32, #tpu.memory_space<vmem>>, vector<1x128xf32>
    %28 = vector.broadcast %27 : vector<1x128xf32> to vector<16x128xf32>
    %29 = arith.addf %26, %28 : vector<16x128xf32>
    %cst_23 = arith.constant 0.000000e+00 : f32
    %30 = vector.broadcast %cst_23 : f32 to vector<16x128xf32>
    %31 = arith.maximumf %29, %30 : vector<16x128xf32>
    %32 = arith.truncf %31 : vector<16x128xf32> to vector<16x128xbf16>
    %c0_24 = arith.constant 0 : index
    %c0_25 = arith.constant 0 : index
    %33 = vector.load %arg10[%c0_24, %c0_25] : memref<128x128xbf16, #tpu.memory_space<vmem>>, vector<128x128xbf16>
    %cst_26 = arith.constant dense<0.000000e+00> : vector<16x128xf32>
    %34 = tpu.matmul %32, %33, %cst_26 {dimension_numbers = #tpu.dot_dimension_numbers<[1], [0], [0], [1], [0, 0, 1, 1], [], []>} : vector<16x128xbf16>, vector<128x128xbf16>, vector<16x128xf32> -> vector<16x128xf32>
    %c0_27 = arith.constant 0 : index
    %c0_28 = arith.constant 0 : index
    %35 = vector.load %arg11[%c0_27, %c0_28] : memref<1x128xf32, #tpu.memory_space<vmem>>, vector<1x128xf32>
    %36 = vector.broadcast %35 : vector<1x128xf32> to vector<16x128xf32>
    %37 = arith.addf %34, %36 : vector<16x128xf32>
    %38 = arith.truncf %37 : vector<16x128xf32> to vector<16x128xbf16>
    %c0_29 = arith.constant 0 : index
    %c0_30 = arith.constant 0 : index
    %39 = vector.load %arg12[%c0_29, %c0_30] : memref<16x128xbf16, #tpu.memory_space<vmem>>, vector<16x128xbf16>
    tpu.vector_store %arg12[%c0_29, %c0_30], %38 {strides = array<i32>} : memref<16x128xbf16, #tpu.memory_space<vmem>>, vector<16x128xbf16>,
    return
  }
  func.func @transform_0(%arg0: i32) -> (i32, i32) {
    %c0_i32 = arith.constant 0 : i32
    %c0_i32_0 = arith.constant 0 : i32
    return %arg0, %c0_i32 : i32, i32
  }
  func.func @transform_1(%arg0: i32) -> (i32, i32) {
    %c0_i32 = arith.constant 0 : i32
    %c0_i32_0 = arith.constant 0 : i32
    %c0_i32_1 = arith.constant 0 : i32
    return %c0_i32, %c0_i32_0 : i32, i32
  }
  func.func @transform_2(%arg0: i32) -> (i32, i32) {
    %c0_i32 = arith.constant 0 : i32
    %c0_i32_0 = arith.constant 0 : i32
    %c0_i32_1 = arith.constant 0 : i32
    return %c0_i32, %c0_i32_0 : i32, i32
  }
  func.func @transform_3(%arg0: i32) -> (i32, i32) {
    %c0_i32 = arith.constant 0 : i32
    %c0_i32_0 = arith.constant 0 : i32
    %c0_i32_1 = arith.constant 0 : i32
    return %c0_i32, %c0_i32_0 : i32, i32
  }
  func.func @transform_4(%arg0: i32) -> (i32, i32) {
    %c0_i32 = arith.constant 0 : i32
    %c0_i32_0 = arith.constant 0 : i32
    %c0_i32_1 = arith.constant 0 : i32
    return %c0_i32, %c0_i32_0 : i32, i32
  }
  func.func @transform_5(%arg0: i32) -> (i32, i32) {
    %c0_i32 = arith.constant 0 : i32
    %c0_i32_0 = arith.constant 0 : i32
    %c0_i32_1 = arith.constant 0 : i32
    return %c0_i32, %c0_i32_0 : i32, i32
  }
  func.func @transform_6(%arg0: i32) -> (i32, i32) {
    %c0_i32 = arith.constant 0 : i32
    %c0_i32_0 = arith.constant 0 : i32
    %c0_i32_1 = arith.constant 0 : i32
    return %c0_i32, %c0_i32_0 : i32, i32
  }
  func.func @transform_7(%arg0: i32) -> (i32, i32) {
    %c0_i32 = arith.constant 0 : i32
    %c0_i32_0 = arith.constant 0 : i32
    %c0_i32_1 = arith.constant 0 : i32
    return %c0_i32, %c0_i32_0 : i32, i32
  }
  func.func @transform_8(%arg0: i32) -> (i32, i32) {
    %c0_i32 = arith.constant 0 : i32
    %c0_i32_0 = arith.constant 0 : i32
    %c0_i32_1 = arith.constant 0 : i32
    return %c0_i32, %c0_i32_0 : i32, i32
  }
  func.func @transform_9(%arg0: i32) -> (i32, i32) {
    %c0_i32 = arith.constant 0 : i32
    %c0_i32_0 = arith.constant 0 : i32
    %c0_i32_1 = arith.constant 0 : i32
    return %c0_i32, %c0_i32_0 : i32, i32
  }
  func.func @transform_10(%arg0: i32) -> (i32, i32) {
    %c0_i32 = arith.constant 0 : i32
    %c0_i32_0 = arith.constant 0 : i32
    %c0_i32_1 = arith.constant 0 : i32
    return %c0_i32, %c0_i32_0 : i32, i32
  }
  func.func @transform_11(%arg0: i32) -> (i32, i32) {
    %c0_i32 = arith.constant 0 : i32
    %c0_i32_0 = arith.constant 0 : i32
    return %arg0, %c0_i32 : i32, i32
  }
}

</mosaic_0001>

<bundles_post_ra>
// kernel: tpu_custom_call.1
= control target key start
LH: loop header
LB: loop body
LE: loop exit
PB: predicated region body
PF: predicated region fallthrough
CT: control target
= control target key end

     0   :  { %16 = vsyncpa [#allocation3], 0  ;;  %s3860_s0 = inlined_call_operand.hbm [shape: bf16[16,784], index: 0, kind: input, shape index: {}]   ;;  %s3861_s1 = inlined_call_operand.hbm [shape: bf16[784,512], index: 1, kind: input, shape index: {}]   ;;  %s3862_s2 = inlined_call_operand.hbm [shape: f32[1,512], index: 2, kind: input, shape index: {}]   ;;  %s3863_s3 = inlined_call_operand.hbm [shape: bf16[512,256], index: 3, kind: input, shape index: {}]   ;;  %s3864_s4 = inlined_call_operand.vmem [shape: f32[1,256], index: 4, kind: input, shape index: {}]   ;;  %s3865_s5 = inlined_call_operand.hbm [shape: bf16[256,128], index: 5, kind: input, shape index: {}]   ;;  %s3866_s6 = inlined_call_operand.vmem [shape: f32[1,128], index: 6, kind: input, shape index: {}]   ;;  %s3867_s7 = inlined_call_operand.hbm [shape: bf16[128,128], index: 7, kind: input, shape index: {}]   ;;  %s3868_s8 = inlined_call_operand.vmem [shape: f32[1,128], index: 8, kind: input, shape index: {}]   ;;  %s3869_s9 = inlined_call_operand.hbm [shape: bf16[128,128], index: 9, kind: input, shape index: {}]   ;;  %s3870_s10 = inlined_call_operand.vmem [shape: f32[1,128], index: 10, kind: input, shape index: {}]   ;;  %s3871_s11 = inlined_call_operand.hbm [shape: bf16[16,128], index: 11, kind: output, shape index: {}]  }
   0x1   :  { %17 = vsyncpa [#allocation6], 0 }
   0x2   :  { %18 = vsyncpa [#allocation9], 0 }
   0x3   :  { %19 = vsyncpa [#allocation12], 0 }
   0x4   :  { %20 = vsyncpa [#allocation4], 0  ;;  %s3673_s17 = smov [#allocation5]  }
   0x5   :  { %s38_s18 = sshll.u32 %s3673_s17, 4  ;;  %s39_s18 = int_to_ptr.vmem [resolvable:$true] %s38_s18 }
   0x6   :  { %s3511_s19 = scalar_lea.vmem %s39_s18, 25088  ;;  %p3516_p1 = scmp.lt.s32.totalorder %s39_s18, %s39_s18 }
   0x7   :  { %p3512_p0 = scmp.ne.s32.totalorder %s39_s18, %s3511_s19  ;;  %p3517_p2 = scmp.lt.s32.totalorder %s3511_s19, %s3511_s19 }
   0x9   :  { %p3518_p3 = por %p3517_p2, %p3516_p1 }
   0xb   :  { %p3519_p4 = pnand %p3518_p3, %p3512_p0 }
   0xd   :  { %3522 = shalt.err (!%p3519_p4)
}
   0xe   :  { %s3674_s20 = smov 256   ;;  %s3675_s21 = smov 16  }
   0xf   :  { %44 = dma.hbm_to_vmem [thread:$0]  %s3861_s1, 25088, %s39_s18, [#allocation6], %s3674_s20, %s3674_s20, %s3675_s21  }
  0x10   :  { %s3676_s24 = smov [#allocation8]  }
  0x11   :  { %s60_s25 = sshll.u32 %s3676_s24, 4  ;;  %s61_s25 = int_to_ptr.vmem [resolvable:$true] %s60_s25 }
  0x12   :  { %s3531_s26 = scalar_lea.vmem %s61_s25, 8192  ;;  %p3536_p6 = scmp.lt.s32.totalorder %s61_s25, %s61_s25 }
  0x13   :  { %p3532_p5 = scmp.ne.s32.totalorder %s61_s25, %s3531_s26  ;;  %p3537_p7 = scmp.lt.s32.totalorder %s3531_s26, %s3531_s26 }
  0x15   :  { %p3538_p8 = por %p3537_p7, %p3536_p6 }
  0x17   :  { %p3539_p9 = pnand %p3538_p8, %p3532_p5 }
  0x19   :  { %3542 = shalt.err (!%p3539_p9)
}
  0x1a   :  { %s3677_s27 = smov 128   ;;  %s3678_s28 = smov 8  }
  0x1b   :  { %66 = dma.hbm_to_vmem [thread:$0]  %s3863_s3, 8192, %s61_s25, [#allocation9], %s3677_s27, %s3677_s27, %s3678_s28  }
  0x1c   :  { %s3679_s12 = smov [#allocation11]   ;;  %s3680_s14 = smov [#allocation2]  }
  0x1d   :  { %s88_s13 = sshll.u32 %s3679_s12, 4  ;;  %s26_s1 = sshll.u32 %s3680_s14, 4  ;;  %s89_s13 = int_to_ptr.vmem [resolvable:$true] %s88_s13  ;;  %s27_s1 = int_to_ptr.vmem [resolvable:$true] %s26_s1 }
  0x1e   :  { %s3551_s15 = scalar_lea.vmem %s89_s13, 1024  ;;  %p3556_p11 = scmp.lt.s32.totalorder %s89_s13, %s89_s13 }
  0x1f   :  { %p3552_p10 = scmp.ne.s32.totalorder %s89_s13, %s3551_s15  ;;  %p3557_p12 = scmp.lt.s32.totalorder %s3551_s15, %s3551_s15 }
  0x21   :  { %p3558_p13 = por %p3557_p12, %p3556_p11 }
  0x23   :  { %p3559_p0 = pnand %p3558_p13, %p3552_p10 }
  0x25   :  { %3562 = shalt.err (!%p3559_p0)
}
  0x26   :  { %s3681_s16 = smov 64   ;;  %s3682_s17 = smov 4  }
  0x27   :  { %94 = dma.hbm_to_vmem [thread:$0]  %s3867_s7, 1024, %s89_s13, [#allocation12], %s3681_s16, %s3681_s16, %s3682_s17  }
  0x28   :  { %s3571_s19 = scalar_lea.vmem %s27_s1, 896  ;;  %p3576_p2 = scmp.lt.s32.totalorder %s27_s1, %s27_s1 }
  0x29   :  { %p3572_p1 = scmp.ne.s32.totalorder %s27_s1, %s3571_s19  ;;  %p3577_p3 = scmp.lt.s32.totalorder %s3571_s19, %s3571_s19 }
  0x2b   :  { %p3578_p4 = por %p3577_p3, %p3576_p2 }
  0x2d   :  { %p3579_p5 = pnand %p3578_p4, %p3572_p1 }
  0x2f   :  { %3582 = shalt.err (!%p3579_p5)
}
  0x30   :  { %s3683_s20 = smov 448   ;;  %s3684_s21 = smov 28  }
  0x31   :  { %32 = dma.hbm_to_vmem [thread:$0]  %s3860_s0, 896, %s27_s1, [#allocation3], %s3683_s20, %s3683_s20, %s3684_s21  }
  0x32   :  { %s3685_s24 = smov [#allocation7]   ;;  %s3686_s26 = smov [#allocation10]  }
  0x33   :  { %s51_s25 = sshll.u32 %s3685_s24, 4  ;;  %s74_s27 = sshll.u32 %s3686_s26, 4  ;;  %s52_s25 = int_to_ptr.vmem [resolvable:$true] %s51_s25  ;;  %s75_s27 = int_to_ptr.vmem [resolvable:$true] %s74_s27 }
  0x34   :  { %s3591_s7 = scalar_lea.vmem %s52_s25, 64  ;;  %p3596_p7 = scmp.lt.s32.totalorder %s52_s25, %s52_s25 }
  0x35   :  { %p3592_p6 = scmp.ne.s32.totalorder %s52_s25, %s3591_s7  ;;  %p3597_p8 = scmp.lt.s32.totalorder %s3591_s7, %s3591_s7 }
  0x37   :  { %p3598_p9 = por %p3597_p8, %p3596_p7 }
  0x39   :  { %p3599_p10 = pnand %p3598_p9, %p3592_p6 }
  0x3b   :  { %3602 = shalt.err (!%p3599_p10)
}
  0x3c   :  { %54 = dma.hbm_to_vmem [thread:$0]  %s3862_s2, 64, %s52_s25, [#allocation6]  }
  0x3d   :  { %s3611_s30 = scalar_lea.vmem %s75_s27, 2048  ;;  %p3616_p12 = scmp.lt.s32.totalorder %s75_s27, %s75_s27 }
  0x3e   :  { %p3612_p11 = scmp.ne.s32.totalorder %s75_s27, %s3611_s30  ;;  %p3617_p13 = scmp.lt.s32.totalorder %s3611_s30, %s3611_s30 }
  0x40   :  { %p3618_p0 = por %p3617_p13, %p3616_p12 }
  0x42   :  { %p3619_p1 = pnand %p3618_p0, %p3612_p11 }
  0x44   :  { %3622 = shalt.err (!%p3619_p1)
}
  0x45   :  { %80 = dma.hbm_to_vmem [thread:$0]  %s3865_s5, 2048, %s75_s27, [#allocation9], %s3681_s16, %s3681_s16, %s3682_s17  }
  0x46   :  { %s3687_s13 = smov [#allocation13]  }
  0x47   :  { %s102_s14 = sshll.u32 %s3687_s13, 4  ;;  %s103_s14 = int_to_ptr.vmem [resolvable:$true] %s102_s14 }
  0x48   :  { %s3631_s1 = scalar_lea.vmem %s103_s14, 1024  ;;  %p3636_p3 = scmp.lt.s32.totalorder %s103_s14, %s103_s14 }
  0x49   :  { %p3632_p2 = scmp.ne.s32.totalorder %s103_s14, %s3631_s1  ;;  %p3637_p4 = scmp.lt.s32.totalorder %s3631_s1, %s3631_s1 }
  0x4b   :  { %p3638_p5 = por %p3637_p4, %p3636_p3 }
  0x4d   :  { %p3639_p6 = pnand %p3638_p5, %p3632_p2 }
  0x4f   :  { %3642 = shalt.err (!%p3639_p6)
}
  0x50   :  { %108 = dma.hbm_to_vmem [thread:$0]  %s3869_s9, 1024, %s103_s14, [#allocation12], %s3681_s16, %s3681_s16, %s3682_s17  }
  0x51   :  { %3663 = dma.done.wait [#allocation3], 896  }
  0x52   :  { %3664 = vsyncadd [#allocation3], 4294966400 }
  0x53   :  { %3665 = dma.done.wait [#allocation6], 25152  }
  0x54   :  { %3666 = vsyncadd [#allocation6], 4294942144 }
  0x55   :  { %3667 = dma.done.wait [#allocation9], 10240  }
  0x56   :  { %3668 = vsyncadd [#allocation9], 4294957056 }
  0x57   :  { %3669 = dma.done.wait [#allocation12], 2048  }
  0x58   :  { %3670 = vsyncadd [#allocation12], 4294965248  ;;  %v3070_v0 = vld [vmem:[#allocation5 + $0xe4] ss:$16 sps:$4 sm:$0xff]   ;;  %v3074_v2 = vld [vmem:[#allocation5 + $0xe0] ss:$16 sps:$4 sm:$0xff]  }
  0x59   :  { %v3072_v1 = vld [vmem:[#allocation5 + $0x2e4] ss:$16 sps:$4 sm:$0xff]   ;;  %1378 = vmatprep.subr.bf16.mxu0 %v3070_v0  ;;  %v3075_v3 = vld [vmem:[#allocation5 + $0x2e0] ss:$16 sps:$4 sm:$0xff]   ;;  %v3782_v49 = vld [vmem:[#allocation2 + $0x4] ss:$28 sps:$4 sm:$0xff]  }
  0x5a   :  { %1421 = vmatprep.subr.bf16.mxu1 %v3072_v1  ;;  %v3076_v4 = vld [vmem:[#allocation5 + $0xc4] ss:$16 sps:$4 sm:$0xff]   ;;  %1379 = vmatpush1.bf16.msra.mxu0 %v3074_v2  ;;  %v3080_v6 = vld [vmem:[#allocation5 + $0xc0] ss:$16 sps:$4 sm:$0xff]   ;;  %vm1374_vm0 = vcmask 130048   ;;  %vm3690_vm1 = vmmov 0  }
  0x5b   :  { %1422 = vmatpush1.bf16.msra.mxu1 %v3075_v3  ;;  %v3078_v5 = vld [vmem:[#allocation5 + $0x2c4] ss:$16 sps:$4 sm:$0xff]   ;;  %1380 = vmatprep.subr.bf16.mxu0 %v3076_v4  ;;  %v3081_v7 = vld [vmem:[#allocation5 + $0x2c0] ss:$16 sps:$4 sm:$0xff]   ;;  %s3691_s21 = smov [#allocation14]  }
  0x5c   :  { %1423 = vmatprep.subr.bf16.mxu1 %v3078_v5  ;;  %v3082_v8 = vld [vmem:[#allocation5 + $0xa4] ss:$16 sps:$4 sm:$0xff]   ;;  %v3086_v10 = vld [vmem:[#allocation5 + $0xa0] ss:$16 sps:$4 sm:$0xff]   ;;  %1410 = vmatprep.mubr.bf16.mxu0 %v3782_v49  ;;  %s2643_s22 = sshll.u32 %s3691_s21, 4  ;;  %s2644_s22 = int_to_ptr.vmem [resolvable:$true] %s2643_s22 }
  0x5d   :  { %v3084_v9 = vld [vmem:[#allocation5 + $0x2a4] ss:$16 sps:$4 sm:$0xff]   ;;  %v3087_v11 = vld [vmem:[#allocation5 + $0x2a0] ss:$16 sps:$4 sm:$0xff]   ;;  %p3648_p8 = scmp.lt.s32.totalorder %s2644_s22, %s2644_s22 }
  0x5e   :  { %1381 = vmatpush1.bf16.msra.mxu0 %v3080_v6  ;;  %v3088_v12 = vld [vmem:[#allocation5 + $0x84] ss:$16 sps:$4 sm:$0xff]   ;;  %v3092_v14 = vld [vmem:[#allocation5 + $0x80] ss:$16 sps:$4 sm:$0xff]  }
  0x5f   :  { %1424 = vmatpush1.bf16.msra.mxu1 %v3081_v7  ;;  %1382 = vmatprep.subr.bf16.mxu0 %v3082_v8  ;;  %v3090_v13 = vld [vmem:[#allocation5 + $0x284] ss:$16 sps:$4 sm:$0xff]   ;;  %v3093_v15 = vld [vmem:[#allocation5 + $0x280] ss:$16 sps:$4 sm:$0xff]  }
  0x60   :  { %1425 = vmatprep.subr.bf16.mxu1 %v3084_v9  ;;  %v3094_v16 = vld [vmem:[#allocation5 + $0x64] ss:$16 sps:$4 sm:$0xff]   ;;  %v3098_v18 = vld [vmem:[#allocation5 + $0x60] ss:$16 sps:$4 sm:$0xff]   ;;  %v3183_v9 = vld [vmem:[#allocation5 + $0xec] ss:$16 sps:$4 sm:$0xff]  }
  0x61   :  { %v3096_v17 = vld [vmem:[#allocation5 + $0x264] ss:$16 sps:$4 sm:$0xff]   ;;  %v3099_v19 = vld [vmem:[#allocation5 + $0x260] ss:$16 sps:$4 sm:$0xff]  }
  0x62   :  { %1383 = vmatpush1.bf16.msra.mxu0 %v3086_v10  ;;  %v3100_v20 = vld [vmem:[#allocation5 + $0x44] ss:$16 sps:$4 sm:$0xff]   ;;  %v3104_v22 = vld [vmem:[#allocation5 + $0x40] ss:$16 sps:$4 sm:$0xff]  }
  0x63   :  { %1426 = vmatpush1.bf16.msra.mxu1 %v3087_v11  ;;  %1384 = vmatprep.subr.bf16.mxu0 %v3088_v12  ;;  %v3102_v21 = vld [vmem:[#allocation5 + $0x244] ss:$16 sps:$4 sm:$0xff]   ;;  %v3105_v23 = vld [vmem:[#allocation5 + $0x240] ss:$16 sps:$4 sm:$0xff]   ;;  %v3688_v11 = vmov 0  }
  0x64   :  { %1427 = vmatprep.subr.bf16.mxu1 %v3090_v13  ;;  %v3106_v24 = vld [vmem:[#allocation5 + $0x24] ss:$16 sps:$4 sm:$0xff]   ;;  %v3110_v26 = vld [vmem:[#allocation5 + $0x20] ss:$16 sps:$4 sm:$0xff]   ;;  %v3181_v13 = vld [vmem:[#allocation5 + $0xe8] ss:$16 sps:$4 sm:$0xff]  }
  0x65   :  { %v3108_v25 = vld [vmem:[#allocation5 + $0x224] ss:$16 sps:$4 sm:$0xff]   ;;  %v3111_v27 = vld [vmem:[#allocation5 + $0x220] ss:$16 sps:$4 sm:$0xff]  }
  0x66   :  { %1385 = vmatpush1.bf16.msra.mxu0 %v3092_v14  ;;  %v3112_v28 = vld [vmem:[#allocation5 + $0x4] ss:$16 sps:$4 sm:$0xff]   ;;  %v3116_v30 = vld [vmem:[#allocation5] ss:$16 sps:$4 sm:$0xff]  }
  0x67   :  { %1428 = vmatpush1.bf16.msra.mxu1 %v3093_v15  ;;  %1386 = vmatprep.subr.bf16.mxu0 %v3094_v16  ;;  %v3114_v29 = vld [vmem:[#allocation5 + $0x204] ss:$16 sps:$4 sm:$0xff]   ;;  %v3117_v31 = vld [vmem:[#allocation5 + $0x200] ss:$16 sps:$4 sm:$0xff]   ;;  %v3190_v16 = vld [vmem:[#allocation5 + $0xcc] ss:$16 sps:$4 sm:$0xff]  }
  0x68   :  { %1429 = vmatprep.subr.bf16.mxu1 %v3096_v17  ;;  %v3118_v32 = vld [vmem:[#allocation5 + $0x1e4] ss:$16 sps:$4 sm:$0xff]   ;;  %v3122_v34 = vld [vmem:[#allocation5 + $0x1e0] ss:$16 sps:$4 sm:$0xff]  }
  0x69   :  { %v3120_v33 = vld [vmem:[#allocation5 + $0x3e4] ss:$16 sps:$4 sm:$0xff]   ;;  %v3123_v35 = vld [vmem:[#allocation5 + $0x3e0] ss:$16 sps:$4 sm:$0xff]  }
  0x6a   :  { %1387 = vmatpush1.bf16.msra.mxu0 %v3098_v18  ;;  %v3124_v36 = vld [vmem:[#allocation5 + $0x1c4] ss:$16 sps:$4 sm:$0xff]   ;;  %v3128_v38 = vld [vmem:[#allocation5 + $0x1c0] ss:$16 sps:$4 sm:$0xff]   ;;  %v3188_v18 = vld [vmem:[#allocation5 + $0xc8] ss:$16 sps:$4 sm:$0xff]  }
  0x6b   :  { %1430 = vmatpush1.bf16.msra.mxu1 %v3099_v19  ;;  %1388 = vmatprep.subr.bf16.mxu0 %v3100_v20  ;;  %v3126_v37 = vld [vmem:[#allocation5 + $0x3c4] ss:$16 sps:$4 sm:$0xff]   ;;  %v3129_v39 = vld [vmem:[#allocation5 + $0x3c0] ss:$16 sps:$4 sm:$0xff]   ;;  %v3196_v20 = vld [vmem:[#allocation5 + $0xac] ss:$16 sps:$4 sm:$0xff]  }
  0x6c   :  { %1431 = vmatprep.subr.bf16.mxu1 %v3102_v21  ;;  %v3130_v40 = vld [vmem:[#allocation5 + $0x1a4] ss:$16 sps:$4 sm:$0xff]   ;;  %v3134_v42 = vld [vmem:[#allocation5 + $0x1a0] ss:$16 sps:$4 sm:$0xff]  }
  0x6d   :  { %v3132_v41 = vld [vmem:[#allocation5 + $0x3a4] ss:$16 sps:$4 sm:$0xff]   ;;  %v3135_v43 = vld [vmem:[#allocation5 + $0x3a0] ss:$16 sps:$4 sm:$0xff]  }
  0x6e   :  { %1389 = vmatpush1.bf16.msra.mxu0 %v3104_v22  ;;  %v3136_v44 = vld [vmem:[#allocation5 + $0x184] ss:$16 sps:$4 sm:$0xff]   ;;  %v3140_v46 = vld [vmem:[#allocation5 + $0x180] ss:$16 sps:$4 sm:$0xff]   ;;  %v3194_v22 = vld [vmem:[#allocation5 + $0xa8] ss:$16 sps:$4 sm:$0xff]  }
  0x6f   :  { %1432 = vmatpush1.bf16.msra.mxu1 %v3105_v23  ;;  %1390 = vmatprep.subr.bf16.mxu0 %v3106_v24  ;;  %v3138_v45 = vld [vmem:[#allocation5 + $0x384] ss:$16 sps:$4 sm:$0xff]   ;;  %v3141_v47 = vld [vmem:[#allocation5 + $0x380] ss:$16 sps:$4 sm:$0xff]   ;;  %v3202_v24 = vld [vmem:[#allocation5 + $0x8c] ss:$16 sps:$4 sm:$0xff]  }
  0x70   :  { %1433 = vmatprep.subr.bf16.mxu1 %v3108_v25  ;;  %v3142_v48 = vld [vmem:[#allocation5 + $0x164] ss:$16 sps:$4 sm:$0xff]   ;;  %v3146_v52 = vld [vmem:[#allocation5 + $0x160] ss:$16 sps:$4 sm:$0xff]  }
  0x71   :  { %v3144_v50 = vld [vmem:[#allocation5 + $0x364] ss:$16 sps:$4 sm:$0xff]   ;;  %v3147_v53 = vld [vmem:[#allocation5 + $0x360] ss:$16 sps:$4 sm:$0xff]  }
  0x72   :  { %1391 = vmatpush1.bf16.msra.mxu0 %v3110_v26  ;;  %v3784_v51 = vld [vmem:[#allocation2 + $0xc] ss:$28 sps:$4 sm:$0xff]   ;;  %v3788_v4 = vld [vmem:[#allocation2] ss:$28 sps:$4 sm:$0xff]   ;;  %v3792_v14 = vld [vmem:[#allocation2 + $0x18] ss:$28 sps:$4 sm:$0xff]  }
  0x73   :  { %1434 = vmatpush1.bf16.msra.mxu1 %v3111_v27  ;;  %1392 = vmatprep.subr.bf16.mxu0 %v3112_v28  ;;  %v3148_v54 = vld [vmem:[#allocation5 + $0x144] ss:$16 sps:$4 sm:$0xff]   ;;  %v3152_v56 = vld [vmem:[#allocation5 + $0x140] ss:$16 sps:$4 sm:$0xff]   ;;  %v3200_v26 = vld [vmem:[#allocation5 + $0x88] ss:$16 sps:$4 sm:$0xff]  }
  0x74   :  { %1435 = vmatprep.subr.bf16.mxu1 %v3114_v29  ;;  %1453 = vmatprep.mubr.bf16.mxu1 %v3784_v51  ;;  %v3150_v55 = vld [vmem:[#allocation5 + $0x344] ss:$16 sps:$4 sm:$0xff]   ;;  %v3153_v57 = vld [vmem:[#allocation5 + $0x340] ss:$16 sps:$4 sm:$0xff]   ;;  %v3208_v28 = vld [vmem:[#allocation5 + $0x6c] ss:$16 sps:$4 sm:$0xff]  }
  0x75   :  { %v3154_v58 = vld [vmem:[#allocation5 + $0x124] ss:$16 sps:$4 sm:$0xff]   ;;  %v3158_v60 = vld [vmem:[#allocation5 + $0x120] ss:$16 sps:$4 sm:$0xff]  }
  0x76   :  { %1393 = vmatpush1.bf16.msra.mxu0 %v3116_v30  ;;  %v3156_v59 = vld [vmem:[#allocation5 + $0x324] ss:$16 sps:$4 sm:$0xff]   ;;  %v3159_v61 = vld [vmem:[#allocation5 + $0x320] ss:$16 sps:$4 sm:$0xff]   ;;  %v3206_v30 = vld [vmem:[#allocation5 + $0x68] ss:$16 sps:$4 sm:$0xff]  }
  0x77   :  { %1436 = vmatpush1.bf16.msra.mxu1 %v3117_v31  ;;  %1394 = vmatprep.subr.bf16.mxu0 %v3118_v32  ;;  %v3160_v62 = vld [vmem:[#allocation5 + $0x104] ss:$16 sps:$4 sm:$0xff]   ;;  %v3164_v0 = vld [vmem:[#allocation5 + $0x100] ss:$16 sps:$4 sm:$0xff]   ;;  %v3214_v32 = vld [vmem:[#allocation5 + $0x4c] ss:$16 sps:$4 sm:$0xff]  }
  0x78   :  { %1437 = vmatprep.subr.bf16.mxu1 %v3120_v33  ;;  %v3162_v63 = vld [vmem:[#allocation5 + $0x304] ss:$16 sps:$4 sm:$0xff]   ;;  %v3165_v1 = vld [vmem:[#allocation5 + $0x300] ss:$16 sps:$4 sm:$0xff]   ;;  %v3797_v33 = vld [vmem:[#allocation2 + $0x14] ss:$28 sps:$4 sm:$0xff]  }
  0x79   :  { %v3174_v2 = vld [vmem:[#allocation5 + $0x4e4] ss:$16 sps:$4 sm:$0xff]   ;;  %v3169_v5 = vld [vmem:[#allocation2 + $0x8] ss:$28 sps:$4 sm:$0xff]  }
  0x7a   :  { %1395 = vmatpush2.bf16.msra.mxu0 %v3122_v34  ;;  %v3177_v3 = vld [vmem:[#allocation5 + $0x604] ss:$16 sps:$4 sm:$0xff]   ;;  %v3172_v6 = vld [vmem:[#allocation5 + $0x4e0] ss:$16 sps:$4 sm:$0xff]  }
  0x7b   :  { %1438 = vmatpush2.bf16.msra.mxu1 %v3123_v35  ;;  %1396 = vmatprep.subr.bf16.mxu0 %v3124_v36  ;;  %v3175_v7 = vld [vmem:[#allocation5 + $0x600] ss:$16 sps:$4 sm:$0xff]   ;;  %v3180_v8 = vld [vmem:[#allocation5 + $0x4c4] ss:$16 sps:$4 sm:$0xff]   ;;  %v3212_v35 = vld [vmem:[#allocation5 + $0x48] ss:$16 sps:$4 sm:$0xff]  }
  0x7c   :  { %1439 = vmatprep.subr.bf16.mxu1 %v3126_v37  ;;  %v3178_v10 = vld [vmem:[#allocation5 + $0x4c0] ss:$16 sps:$4 sm:$0xff]   ;;  %v3186_v12 = vld [vmem:[#allocation5 + $0x4a4] ss:$16 sps:$4 sm:$0xff]   ;;  %v3220_v37 = vld [vmem:[#allocation5 + $0x2c] ss:$16 sps:$4 sm:$0xff]  }
  0x7d   :  { %v3184_v15 = vld [vmem:[#allocation5 + $0x4a0] ss:$16 sps:$4 sm:$0xff]   ;;  %v3193_v17 = vld [vmem:[#allocation5 + $0x484] ss:$16 sps:$4 sm:$0xff]  }
  0x7e   :  { %1397 = vmatpush2.bf16.msra.mxu0 %v3128_v38  ;;  %v3191_v19 = vld [vmem:[#allocation5 + $0x480] ss:$16 sps:$4 sm:$0xff]   ;;  %v3199_v21 = vld [vmem:[#allocation5 + $0x464] ss:$16 sps:$4 sm:$0xff]  }
  0x7f   :  { %1440 = vmatpush2.bf16.msra.mxu1 %v3129_v39  ;;  %1398 = vmatprep.subr.bf16.mxu0 %v3130_v40  ;;  %v3197_v23 = vld [vmem:[#allocation5 + $0x460] ss:$16 sps:$4 sm:$0xff]   ;;  %v3205_v25 = vld [vmem:[#allocation5 + $0x444] ss:$16 sps:$4 sm:$0xff]   ;;  %v3218_v39 = vld [vmem:[#allocation5 + $0x28] ss:$16 sps:$4 sm:$0xff]  }
  0x80   :  { %1441 = vmatprep.subr.bf16.mxu1 %v3132_v41  ;;  %v3203_v27 = vld [vmem:[#allocation5 + $0x440] ss:$16 sps:$4 sm:$0xff]   ;;  %v3211_v29 = vld [vmem:[#allocation5 + $0x424] ss:$16 sps:$4 sm:$0xff]   ;;  %v3226_v41 = vld [vmem:[#allocation5 + $0xc] ss:$16 sps:$4 sm:$0xff]  }
  0x81   :  { %v3209_v31 = vld [vmem:[#allocation5 + $0x420] ss:$16 sps:$4 sm:$0xff]   ;;  %v3217_v34 = vld [vmem:[#allocation5 + $0x404] ss:$16 sps:$4 sm:$0xff]  }
  0x82   :  { %1399 = vmatpush2.bf16.msra.mxu0 %v3134_v42  ;;  %v3215_v36 = vld [vmem:[#allocation5 + $0x400] ss:$16 sps:$4 sm:$0xff]   ;;  %v3223_v38 = vld [vmem:[#allocation5 + $0x5e4] ss:$16 sps:$4 sm:$0xff]  }
  0x83   :  { %1442 = vmatpush2.bf16.msra.mxu1 %v3135_v43  ;;  %1400 = vmatprep.subr.bf16.mxu0 %v3136_v44  ;;  %v3221_v40 = vld [vmem:[#allocation5 + $0x5e0] ss:$16 sps:$4 sm:$0xff]   ;;  %v3229_v42 = vld [vmem:[#allocation5 + $0x5c4] ss:$16 sps:$4 sm:$0xff]   ;;  %v3224_v43 = vld [vmem:[#allocation5 + $0x8] ss:$16 sps:$4 sm:$0xff]  }
  0x84   :  { %1443 = vmatprep.subr.bf16.mxu1 %v3138_v45  ;;  %v3227_v44 = vld [vmem:[#allocation5 + $0x5c0] ss:$16 sps:$4 sm:$0xff]   ;;  %v3232_v45 = vld [vmem:[#allocation5 + $0x1ec] ss:$16 sps:$4 sm:$0xff]  }
  0x86   :  { %1401 = vmatpush2.bf16.msra.mxu0 %v3140_v46  ;;  %v3235_v46 = vld [vmem:[#allocation5 + $0x5a4] ss:$16 sps:$4 sm:$0xff]  }
  0x87   :  { %1444 = vmatpush2.bf16.msra.mxu1 %v3141_v47  ;;  %1402 = vmatprep.subr.bf16.mxu0 %v3142_v48  ;;  %v3230_v47 = vld [vmem:[#allocation5 + $0x1e8] ss:$16 sps:$4 sm:$0xff]   ;;  %v3233_v48 = vld [vmem:[#allocation5 + $0x5a0] ss:$16 sps:$4 sm:$0xff]  }
  0x88   :  { %1445 = vmatprep.subr.bf16.mxu1 %v3144_v50  ;;  %v3241_v50 = vld [vmem:[#allocation5 + $0x584] ss:$16 sps:$4 sm:$0xff]  }
  0x8a   :  { %1403 = vmatpush2.bf16.msra.mxu0 %v3146_v52  ;;  %v3236_v52 = vld [vmem:[#allocation5 + $0x1c8] ss:$16 sps:$4 sm:$0xff]  }
  0x8b   :  { %1446 = vmatpush2.bf16.msra.mxu1 %v3147_v53  ;;  %1404 = vmatprep.subr.bf16.mxu0 %v3148_v54  ;;  %v3239_v53 = vld [vmem:[#allocation5 + $0x580] ss:$16 sps:$4 sm:$0xff]   ;;  %v3244_v54 = vld [vmem:[#allocation5 + $0x1ac] ss:$16 sps:$4 sm:$0xff]  }
  0x8c   :  { %1447 = vmatprep.subr.bf16.mxu1 %v3150_v55  ;;  %v3247_v55 = vld [vmem:[#allocation5 + $0x564] ss:$16 sps:$4 sm:$0xff]  }
  0x8e   :  { %1405 = vmatpush2.bf16.msra.mxu0 %v3152_v56  ;;  %v3242_v56 = vld [vmem:[#allocation5 + $0x1a8] ss:$16 sps:$4 sm:$0xff]  }
  0x8f   :  { %1448 = vmatpush2.bf16.msra.mxu1 %v3153_v57  ;;  %1406 = vmatprep.subr.bf16.mxu0 %v3154_v58  ;;  %v3245_v57 = vld [vmem:[#allocation5 + $0x560] ss:$16 sps:$4 sm:$0xff]   ;;  %v3250_v58 = vld [vmem:[#allocation5 + $0x18c] ss:$16 sps:$4 sm:$0xff]  }
  0x90   :  { %1449 = vmatprep.subr.bf16.mxu1 %v3156_v59  ;;  %v3253_v59 = vld [vmem:[#allocation5 + $0x544] ss:$16 sps:$4 sm:$0xff]  }
  0x92   :  { %1407 = vmatpush2.bf16.msra.mxu0 %v3158_v60  ;;  %v3248_v60 = vld [vmem:[#allocation5 + $0x188] ss:$16 sps:$4 sm:$0xff]  }
  0x93   :  { %1450 = vmatpush2.bf16.msra.mxu1 %v3159_v61  ;;  %1408 = vmatprep.subr.bf16.mxu0 %v3160_v62  ;;  %v3251_v61 = vld [vmem:[#allocation5 + $0x540] ss:$16 sps:$4 sm:$0xff]   ;;  %v3256_v62 = vld [vmem:[#allocation5 + $0x16c] ss:$16 sps:$4 sm:$0xff]  }
  0x94   :  { %1451 = vmatprep.subr.bf16.mxu1 %v3162_v63  ;;  %v3259_v63 = vld [vmem:[#allocation5 + $0x524] ss:$16 sps:$4 sm:$0xff]  }
  0x96   :  { %1409 = vmatpush2.bf16.msra.mxu0 %v3164_v0  ;;  %v3254_v0 = vld [vmem:[#allocation5 + $0x168] ss:$16 sps:$4 sm:$0xff]  }
  0x97   :  { %1452 = vmatpush2.bf16.msra.mxu1 %v3165_v1  ;;  %1464 = vmatprep.subr.bf16.mxu0 %v3174_v2  ;;  %v3257_v1 = vld [vmem:[#allocation5 + $0x520] ss:$16 sps:$4 sm:$0xff]   ;;  %v3262_v2 = vld [vmem:[#allocation5 + $0x14c] ss:$16 sps:$4 sm:$0xff]  }
  0x98   :  { %1521 = vmatprep.subr.bf16.mxu1 %v3177_v3  ;;  %v3265_v3 = vld [vmem:[#allocation5 + $0x504] ss:$16 sps:$4 sm:$0xff]  }
  0x99   :  { %1411 = vmatmul.mubr.bf16.vlgmr.msra.gmra.mxu0 %v3788_v4 }
  0x9a   :  { %1454 = vmatmul.mubr.bf16.vlgmr.msra.gmra.mxu1 %v3169_v5  ;;  %1465 = vmatpush1.bf16.msra.mxu0 %v3172_v6  ;;  %v3260_v5 = vld [vmem:[#allocation5 + $0x148] ss:$16 sps:$4 sm:$0xff]   ;;  %v3263_v6 = vld [vmem:[#allocation5 + $0x500] ss:$16 sps:$4 sm:$0xff]  }
  0x9b   :  { %1522 = vmatpush1.bf16.msra.mxu1 %v3175_v7  ;;  %1466 = vmatprep.subr.bf16.mxu0 %v3180_v8  ;;  %v3271_v7 = vld [vmem:[#allocation5 + $0x12c] ss:$16 sps:$4 sm:$0xff]  }
  0x9c   :  { %1539 = vmatprep.mubr.bf16.mxu1 %v3688_v11  ;;  %1550 = vmatprep.subr.bf16.mxu1 %v3183_v9  ;;  %v3274_v8 = vld [vmem:[#allocation5 + $0x2ec] ss:$16 sps:$4 sm:$0xff]   ;;  %v3800_v9 = vld [vmem:[#allocation2 + $0x10] ss:$28 sps:$4 sm:$0xff]  }
  0x9d   :  { %1496 = vmatprep.mubr.bf16.mxu0 %v3797_v33 }
  0x9e   :  { %1467 = vmatpush1.bf16.msra.mxu0 %v3178_v10  ;;  %v3269_v10 = vld [vmem:[#allocation5 + $0x128] ss:$16 sps:$4 sm:$0xff]  }
  0x9f   :  { %1468 = vmatprep.subr.bf16.mxu0 %v3186_v12  ;;  %v3272_v12 = vld [vmem:[#allocation5 + $0x2e8] ss:$16 sps:$4 sm:$0xff]  }
  0xa2   :  { %2861 = vmatmul.mubr.msk.bf16.vlgmr.msra.gmra.mxu1 %vm1374_vm0, %v3792_v14  ;;  %1469 = vmatpush1.bf16.msra.mxu0 %v3184_v15  ;;  %v3280_v15 = vld [vmem:[#allocation5 + $0x2cc] ss:$16 sps:$4 sm:$0xff]  }
  0xa3   :  { %1551 = vmatpush1.bf16.msra.mxu1 %v3181_v13  ;;  %1470 = vmatprep.subr.bf16.mxu0 %v3193_v17  ;;  %v3277_v13 = vld [vmem:[#allocation5 + $0x10c] ss:$16 sps:$4 sm:$0xff]   ;;  %v3278_v17 = vld [vmem:[#allocation5 + $0x2c8] ss:$16 sps:$4 sm:$0xff]  }
  0xa4   :  { %1552 = vmatprep.subr.bf16.mxu1 %v3190_v16  ;;  %1582 = vmatprep.mubr.bf16.mxu1 %v3782_v49  ;;  %v3238_v49 = vld [vmem:[#allocation5 + $0x1cc] ss:$16 sps:$4 sm:$0xff]   ;;  %v3275_v16 = vld [vmem:[#allocation5 + $0x108] ss:$16 sps:$4 sm:$0xff]  }
  0xa6   :  { %1471 = vmatpush1.bf16.msra.mxu0 %v3191_v19  ;;  %v3286_v19 = vld [vmem:[#allocation5 + $0x2ac] ss:$16 sps:$4 sm:$0xff]  }
  0xa7   :  { %1553 = vmatpush1.bf16.msra.mxu1 %v3188_v18  ;;  %1472 = vmatprep.subr.bf16.mxu0 %v3199_v21  ;;  %v3283_v18 = vld [vmem:[#allocation5 + $0x4ec] ss:$16 sps:$4 sm:$0xff]   ;;  %v3284_v21 = vld [vmem:[#allocation5 + $0x2a8] ss:$16 sps:$4 sm:$0xff]  }
  0xa8   :  { %1554 = vmatprep.subr.bf16.mxu1 %v3196_v20  ;;  %v3281_v20 = vld [vmem:[#allocation5 + $0x4e8] ss:$16 sps:$4 sm:$0xff]  }
  0xaa   :  { %1473 = vmatpush1.bf16.msra.mxu0 %v3197_v23  ;;  %v3292_v23 = vld [vmem:[#allocation5 + $0x28c] ss:$16 sps:$4 sm:$0xff]  }
  0xab   :  { %1555 = vmatpush1.bf16.msra.mxu1 %v3194_v22  ;;  %1474 = vmatprep.subr.bf16.mxu0 %v3205_v25  ;;  %v3289_v22 = vld [vmem:[#allocation5 + $0x4cc] ss:$16 sps:$4 sm:$0xff]   ;;  %v3290_v25 = vld [vmem:[#allocation5 + $0x288] ss:$16 sps:$4 sm:$0xff]  }
  0xac   :  { %1556 = vmatprep.subr.bf16.mxu1 %v3202_v24  ;;  %v3287_v24 = vld [vmem:[#allocation5 + $0x4c8] ss:$16 sps:$4 sm:$0xff]  }
  0xae   :  { %1475 = vmatpush1.bf16.msra.mxu0 %v3203_v27  ;;  %v3298_v27 = vld [vmem:[#allocation5 + $0x26c] ss:$16 sps:$4 sm:$0xff]  }
  0xaf   :  { %1557 = vmatpush1.bf16.msra.mxu1 %v3200_v26  ;;  %1476 = vmatprep.subr.bf16.mxu0 %v3211_v29  ;;  %v3295_v26 = vld [vmem:[#allocation5 + $0x4ac] ss:$16 sps:$4 sm:$0xff]   ;;  %v3296_v29 = vld [vmem:[#allocation5 + $0x268] ss:$16 sps:$4 sm:$0xff]  }
  0xb0   :  { %1558 = vmatprep.subr.bf16.mxu1 %v3208_v28  ;;  %v3293_v28 = vld [vmem:[#allocation5 + $0x4a8] ss:$16 sps:$4 sm:$0xff]  }
  0xb2   :  { %1477 = vmatpush1.bf16.msra.mxu0 %v3209_v31  ;;  %v3299_v31 = vld [vmem:[#allocation5 + $0x488] ss:$16 sps:$4 sm:$0xff]  }
  0xb3   :  { %1559 = vmatpush1.bf16.msra.mxu1 %v3206_v30  ;;  %1478 = vmatprep.subr.bf16.mxu0 %v3217_v34  ;;  %v3304_v30 = vld [vmem:[#allocation5 + $0x24c] ss:$16 sps:$4 sm:$0xff]  }
  0xb4   :  { %1560 = vmatprep.subr.bf16.mxu1 %v3214_v32  ;;  %v3307_v32 = vld [vmem:[#allocation5 + $0x46c] ss:$16 sps:$4 sm:$0xff]  }
  0xb5   :  { %v3310_v34 = vld [vmem:[#allocation5 + $0x22c] ss:$16 sps:$4 sm:$0xff]  }
  0xb6   :  { %1479 = vmatpush1.bf16.msra.mxu0 %v3215_v36  ;;  %v3308_v36 = vld [vmem:[#allocation5 + $0x228] ss:$16 sps:$4 sm:$0xff]  }
  0xb7   :  { %1561 = vmatpush1.bf16.msra.mxu1 %v3212_v35  ;;  %1480 = vmatprep.subr.bf16.mxu0 %v3223_v38  ;;  %v3305_v35 = vld [vmem:[#allocation5 + $0x468] ss:$16 sps:$4 sm:$0xff]  }
  0xb8   :  { %1562 = vmatprep.subr.bf16.mxu1 %v3220_v37  ;;  %v3313_v37 = vld [vmem:[#allocation5 + $0x44c] ss:$16 sps:$4 sm:$0xff]   ;;  %v3311_v38 = vld [vmem:[#allocation5 + $0x448] ss:$16 sps:$4 sm:$0xff]  }
  0xba   :  { %1481 = vmatpush2.bf16.msra.mxu0 %v3221_v40  ;;  %v3319_v40 = vld [vmem:[#allocation5 + $0x42c] ss:$16 sps:$4 sm:$0xff]  }
  0xbb   :  { %1563 = vmatpush1.bf16.msra.mxu1 %v3218_v39  ;;  %1482 = vmatprep.subr.bf16.mxu0 %v3229_v42  ;;  %v3314_v39 = vld [vmem:[#allocation5 + $0x208] ss:$16 sps:$4 sm:$0xff]  }
  0xbc   :  { %1564 = vmatprep.subr.bf16.mxu1 %v3226_v41  ;;  %v3322_v41 = vld [vmem:[#allocation5 + $0x3ec] ss:$16 sps:$4 sm:$0xff]   ;;  %v3317_v42 = vld [vmem:[#allocation5 + $0x428] ss:$16 sps:$4 sm:$0xff]  }
  0xbe   :  { %1483 = vmatpush2.bf16.msra.mxu0 %v3227_v44  ;;  %v3325_v44 = vld [vmem:[#allocation5 + $0x40c] ss:$16 sps:$4 sm:$0xff]  }
  0xbf   :  { %1565 = vmatpush1.bf16.msra.mxu1 %v3224_v43  ;;  %1484 = vmatprep.subr.bf16.mxu0 %v3235_v46  ;;  %v3320_v43 = vld [vmem:[#allocation5 + $0x3e8] ss:$16 sps:$4 sm:$0xff]  }
  0xc0   :  { %1566 = vmatprep.subr.bf16.mxu1 %v3232_v45  ;;  %v3328_v45 = vld [vmem:[#allocation5 + $0x3cc] ss:$16 sps:$4 sm:$0xff]   ;;  %v3323_v46 = vld [vmem:[#allocation5 + $0x408] ss:$16 sps:$4 sm:$0xff]  }
  0xc2   :  { %1485 = vmatpush2.bf16.msra.mxu0 %v3233_v48  ;;  %v3331_v48 = vld [vmem:[#allocation5 + $0x5ec] ss:$16 sps:$4 sm:$0xff]  }
  0xc3   :  { %1567 = vmatpush2.bf16.msra.mxu1 %v3230_v47  ;;  %1486 = vmatprep.subr.bf16.mxu0 %v3241_v50  ;;  %v3326_v47 = vld [vmem:[#allocation5 + $0x3c8] ss:$16 sps:$4 sm:$0xff]  }
  0xc4   :  { %1568 = vmatprep.subr.bf16.mxu1 %v3238_v49  ;;  %v3334_v49 = vld [vmem:[#allocation5 + $0x3ac] ss:$16 sps:$4 sm:$0xff]   ;;  %v3329_v50 = vld [vmem:[#allocation5 + $0x5e8] ss:$16 sps:$4 sm:$0xff]  }
  0xc6   :  { %1487 = vmatpush2.bf16.msra.mxu0 %v3239_v53  ;;  %v3337_v53 = vld [vmem:[#allocation5 + $0x5cc] ss:$16 sps:$4 sm:$0xff]  }
  0xc7   :  { %1569 = vmatpush2.bf16.msra.mxu1 %v3236_v52  ;;  %1488 = vmatprep.subr.bf16.mxu0 %v3247_v55  ;;  %v3332_v52 = vld [vmem:[#allocation5 + $0x3a8] ss:$16 sps:$4 sm:$0xff]  }
  0xc8   :  { %1570 = vmatprep.subr.bf16.mxu1 %v3244_v54  ;;  %v3340_v54 = vld [vmem:[#allocation5 + $0x38c] ss:$16 sps:$4 sm:$0xff]   ;;  %v3335_v55 = vld [vmem:[#allocation5 + $0x5c8] ss:$16 sps:$4 sm:$0xff]  }
  0xca   :  { %1489 = vmatpush2.bf16.msra.mxu0 %v3245_v57  ;;  %v3343_v57 = vld [vmem:[#allocation5 + $0x5ac] ss:$16 sps:$4 sm:$0xff]  }
  0xcb   :  { %1571 = vmatpush2.bf16.msra.mxu1 %v3242_v56  ;;  %1490 = vmatprep.subr.bf16.mxu0 %v3253_v59  ;;  %v3338_v56 = vld [vmem:[#allocation5 + $0x388] ss:$16 sps:$4 sm:$0xff]  }
  0xcc   :  { %1572 = vmatprep.subr.bf16.mxu1 %v3250_v58  ;;  %v3346_v58 = vld [vmem:[#allocation5 + $0x36c] ss:$16 sps:$4 sm:$0xff]   ;;  %v3341_v59 = vld [vmem:[#allocation5 + $0x5a8] ss:$16 sps:$4 sm:$0xff]  }
  0xce   :  { %1491 = vmatpush2.bf16.msra.mxu0 %v3251_v61  ;;  %v3349_v61 = vld [vmem:[#allocation5 + $0x58c] ss:$16 sps:$4 sm:$0xff]  }
  0xcf   :  { %1573 = vmatpush2.bf16.msra.mxu1 %v3248_v60  ;;  %1492 = vmatprep.subr.bf16.mxu0 %v3259_v63  ;;  %v3344_v60 = vld [vmem:[#allocation5 + $0x368] ss:$16 sps:$4 sm:$0xff]  }
  0xd0   :  { %1574 = vmatprep.subr.bf16.mxu1 %v3256_v62  ;;  %v3352_v62 = vld [vmem:[#allocation5 + $0x34c] ss:$16 sps:$4 sm:$0xff]   ;;  %v3347_v63 = vld [vmem:[#allocation5 + $0x588] ss:$16 sps:$4 sm:$0xff]  }
  0xd2   :  { %1493 = vmatpush2.bf16.msra.mxu0 %v3257_v1  ;;  %v3355_v1 = vld [vmem:[#allocation5 + $0x56c] ss:$16 sps:$4 sm:$0xff]  }
  0xd3   :  { %1575 = vmatpush2.bf16.msra.mxu1 %v3254_v0  ;;  %1494 = vmatprep.subr.bf16.mxu0 %v3265_v3  ;;  %v3350_v0 = vld [vmem:[#allocation5 + $0x348] ss:$16 sps:$4 sm:$0xff]  }
  0xd4   :  { %1576 = vmatprep.subr.bf16.mxu1 %v3262_v2  ;;  %v3358_v2 = vld [vmem:[#allocation5 + $0x32c] ss:$16 sps:$4 sm:$0xff]   ;;  %v3353_v3 = vld [vmem:[#allocation5 + $0x568] ss:$16 sps:$4 sm:$0xff]  }
  0xd6   :  { %1495 = vmatpush2.bf16.msra.mxu0 %v3263_v6  ;;  %v3361_v6 = vld [vmem:[#allocation5 + $0x54c] ss:$16 sps:$4 sm:$0xff]  }
  0xd7   :  { %1577 = vmatpush2.bf16.msra.mxu1 %v3260_v5  ;;  %1593 = vmatprep.subr.bf16.mxu0 %v3274_v8  ;;  %v3356_v5 = vld [vmem:[#allocation5 + $0x328] ss:$16 sps:$4 sm:$0xff]  }
  0xd8   :  { %1578 = vmatprep.subr.bf16.mxu1 %v3271_v7  ;;  %v3364_v7 = vld [vmem:[#allocation5 + $0x30c] ss:$16 sps:$4 sm:$0xff]   ;;  %v3359_v8 = vld [vmem:[#allocation5 + $0x548] ss:$16 sps:$4 sm:$0xff]  }
  0xd9   :  { %1497 = vmatmul.mubr.bf16.vlgmr.msra.gmra.mxu0 %v3800_v9 }
  0xda   :  { %1594 = vmatpush1.bf16.msra.mxu0 %v3272_v12  ;;  %1625 = vmatprep.mubr.bf16.mxu0 %v3784_v51  ;;  %v3301_v51 = vld [vmem:[#allocation5 + $0x48c] ss:$16 sps:$4 sm:$0xff]  }
  0xdb   :  { %1579 = vmatpush2.bf16.msra.mxu1 %v3269_v10  ;;  %1595 = vmatprep.subr.bf16.mxu0 %v3280_v15  ;;  %v3362_v10 = vld [vmem:[#allocation5 + $0x308] ss:$16 sps:$4 sm:$0xff]   ;;  %v3367_v12 = vld [vmem:[#allocation5 + $0x52c] ss:$16 sps:$4 sm:$0xff]  }
  0xdc   :  { %1580 = vmatprep.subr.bf16.mxu1 %v3277_v13  ;;  %v3376_v13 = vld [vmem:[#allocation8 + $0x74] ss:$8 sps:$4 sm:$0xff]  }
  0xdd   :  { %v3365_v15 = vld [vmem:[#allocation5 + $0x528] ss:$16 sps:$4 sm:$0xff]  }
  0xde   :  { %1596 = vmatpush1.bf16.msra.mxu0 %v3278_v17  ;;  %v3370_v17 = vld [vmem:[#allocation5 + $0x50c] ss:$16 sps:$4 sm:$0xff]  }
  0xdf   :  { %1581 = vmatpush2.bf16.msra.mxu1 %v3275_v16  ;;  %1597 = vmatprep.subr.bf16.mxu0 %v3286_v19  ;;  %v3374_v16 = vld [vmem:[#allocation8 + $0x70] ss:$8 sps:$4 sm:$0xff]   ;;  %v3502_v19 = vld [vmem:[#allocation2 + $0x8] ss:$28 sps:$4 sm:$0xff]  }
  0xe0   :  { %1636 = vmatprep.subr.bf16.mxu1 %v3283_v18  ;;  %v3379_v18 = vld [vmem:[#allocation8 + $0x64] ss:$8 sps:$4 sm:$0xff]  }
  0xe2   :  { %1583 = vmatmul.mubr.bf16.vlgmr.msra.gmra.mxu1 %v3788_v4  ;;  %1598 = vmatpush1.bf16.msra.mxu0 %v3284_v21  ;;  %v3302_v4 = vld [vmem:[#allocation5 + $0x248] ss:$16 sps:$4 sm:$0xff]   ;;  %v3377_v21 = vld [vmem:[#allocation8 + $0x60] ss:$8 sps:$4 sm:$0xff]  }
  0xe3   :  { %1637 = vmatpush1.bf16.msra.mxu1 %v3281_v20  ;;  %1599 = vmatprep.subr.bf16.mxu0 %v3292_v23  ;;  %v3368_v20 = vld [vmem:[#allocation5 + $0x508] ss:$16 sps:$4 sm:$0xff]  }
  0xe4   :  { %1638 = vmatprep.subr.bf16.mxu1 %v3289_v22  ;;  %1668 = vmatprep.mubr.bf16.mxu1 %v3797_v33  ;;  %v3316_v33 = vld [vmem:[#allocation5 + $0x20c] ss:$16 sps:$4 sm:$0xff]   ;;  %v3382_v23 = vld [vmem:[#allocation8 + $0x54] ss:$8 sps:$4 sm:$0xff]  }
  0xe5   :  { %v3373_v22 = vld [vmem:[#allocation5 + $0x60c] ss:$16 sps:$4 sm:$0xff]  }
  0xe6   :  { %1600 = vmatpush1.bf16.msra.mxu0 %v3290_v25  ;;  %v3380_v25 = vld [vmem:[#allocation8 + $0x50] ss:$8 sps:$4 sm:$0xff]  }
  0xe7   :  { %1639 = vmatpush1.bf16.msra.mxu1 %v3287_v24  ;;  %1601 = vmatprep.subr.bf16.mxu0 %v3298_v27  ;;  %v3371_v24 = vld [vmem:[#allocation5 + $0x608] ss:$16 sps:$4 sm:$0xff]   ;;  %v3383_v27 = vld [vmem:[#allocation8 + $0x40] ss:$8 sps:$4 sm:$0xff]  }
  0xe8   :  { %1640 = vmatprep.subr.bf16.mxu1 %v3295_v26  ;;  %v3385_v26 = vld [vmem:[#allocation8 + $0x44] ss:$8 sps:$4 sm:$0xff]  }
  0xea   :  { %1602 = vmatpush1.bf16.msra.mxu0 %v3296_v29  ;;  %v3386_v29 = vld [vmem:[#allocation8 + $0x30] ss:$8 sps:$4 sm:$0xff]  }
  0xeb   :  { %1641 = vmatpush1.bf16.msra.mxu1 %v3293_v28  ;;  %1603 = vmatprep.subr.bf16.mxu0 %v3304_v30  ;;  %v3388_v28 = vld [vmem:[#allocation8 + $0x34] ss:$8 sps:$4 sm:$0xff]   ;;  %v3422_v30 = vld [vmem:[#allocation8 + $0x170] ss:$8 sps:$4 sm:$0xff]  }
  0xec   :  { %1642 = vmatprep.subr.bf16.mxu1 %v3301_v51  ;;  %v3391_v51 = vld [vmem:[#allocation8 + $0x24] ss:$8 sps:$4 sm:$0xff]  }
  0xee   :  { %1604 = vmatpush1.bf16.msra.mxu0 %v3302_v4  ;;  %v3427_v4 = vld [vmem:[#allocation8 + $0x164] ss:$8 sps:$4 sm:$0xff]  }
  0xef   :  { %1643 = vmatpush1.bf16.msra.mxu1 %v3299_v31  ;;  %1605 = vmatprep.subr.bf16.mxu0 %v3310_v34  ;;  %v3424_v31 = vld [vmem:[#allocation8 + $0x174] ss:$8 sps:$4 sm:$0xff]  }
  0xf0   :  { %1644 = vmatprep.subr.bf16.mxu1 %v3307_v32  ;;  %v3389_v32 = vld [vmem:[#allocation8 + $0x20] ss:$8 sps:$4 sm:$0xff]   ;;  %v3430_v34 = vld [vmem:[#allocation8 + $0x154] ss:$8 sps:$4 sm:$0xff]  }
  0xf2   :  { %1606 = vmatpush1.bf16.msra.mxu0 %v3308_v36  ;;  %v3397_v36 = vld [vmem:[#allocation8 + $0x4] ss:$8 sps:$4 sm:$0xff]  }
  0xf3   :  { %1645 = vmatpush1.bf16.msra.mxu1 %v3305_v35  ;;  %1607 = vmatprep.subr.bf16.mxu0 %v3316_v33  ;;  %v3392_v35 = vld [vmem:[#allocation8 + $0x10] ss:$8 sps:$4 sm:$0xff]   ;;  %v3395_v33 = vld [vmem:[#allocation8] ss:$8 sps:$4 sm:$0xff]  }
  0xf4   :  { %1646 = vmatprep.subr.bf16.mxu1 %v3313_v37  ;;  %v3428_v37 = vld [vmem:[#allocation8 + $0x150] ss:$8 sps:$4 sm:$0xff]  }
  0xf6   :  { %1608 = vmatpush1.bf16.msra.mxu0 %v3314_v39  ;;  %v3431_v39 = vld [vmem:[#allocation8 + $0x140] ss:$8 sps:$4 sm:$0xff]  }
  0xf7   :  { %1647 = vmatpush1.bf16.msra.mxu1 %v3311_v38  ;;  %1609 = vmatprep.subr.bf16.mxu0 %v3322_v41  ;;  %v3400_v38 = vld [vmem:[#allocation8 + $0xf4] ss:$8 sps:$4 sm:$0xff]   ;;  %v3398_v41 = vld [vmem:[#allocation8 + $0xf0] ss:$8 sps:$4 sm:$0xff]  }
  0xf8   :  { %1648 = vmatprep.subr.bf16.mxu1 %v3319_v40  ;;  %v3436_v40 = vld [vmem:[#allocation8 + $0x134] ss:$8 sps:$4 sm:$0xff]  }
  0xfa   :  { %1610 = vmatpush2.bf16.msra.mxu0 %v3320_v43  ;;  %v3434_v43 = vld [vmem:[#allocation8 + $0x130] ss:$8 sps:$4 sm:$0xff]  }
  0xfb   :  { %1649 = vmatpush1.bf16.msra.mxu1 %v3317_v42  ;;  %1611 = vmatprep.subr.bf16.mxu0 %v3328_v45  ;;  %v3403_v42 = vld [vmem:[#allocation8 + $0xe4] ss:$8 sps:$4 sm:$0xff]   ;;  %v3401_v45 = vld [vmem:[#allocation8 + $0xe0] ss:$8 sps:$4 sm:$0xff]  }
  0xfc   :  { %1650 = vmatprep.subr.bf16.mxu1 %v3325_v44  ;;  %v3439_v44 = vld [vmem:[#allocation8 + $0x124] ss:$8 sps:$4 sm:$0xff]  }
  0xfe   :  { %1612 = vmatpush2.bf16.msra.mxu0 %v3326_v47  ;;  %v3437_v47 = vld [vmem:[#allocation8 + $0x120] ss:$8 sps:$4 sm:$0xff]  }
  0xff   :  { %1651 = vmatpush1.bf16.msra.mxu1 %v3323_v46  ;;  %1613 = vmatprep.subr.bf16.mxu0 %v3334_v49  ;;  %v3406_v46 = vld [vmem:[#allocation8 + $0xd4] ss:$8 sps:$4 sm:$0xff]   ;;  %v3404_v49 = vld [vmem:[#allocation8 + $0xd0] ss:$8 sps:$4 sm:$0xff]  }
 0x100   :  { %1652 = vmatprep.subr.bf16.mxu1 %v3331_v48  ;;  %v3442_v48 = vld [vmem:[#allocation8 + $0x114] ss:$8 sps:$4 sm:$0xff]  }
 0x102   :  { %1614 = vmatpush2.bf16.msra.mxu0 %v3332_v52  ;;  %v3440_v52 = vld [vmem:[#allocation8 + $0x110] ss:$8 sps:$4 sm:$0xff]  }
 0x103   :  { %1653 = vmatpush2.bf16.msra.mxu1 %v3329_v50  ;;  %1615 = vmatprep.subr.bf16.mxu0 %v3340_v54  ;;  %v3409_v50 = vld [vmem:[#allocation8 + $0xc4] ss:$8 sps:$4 sm:$0xff]   ;;  %v3407_v54 = vld [vmem:[#allocation8 + $0xc0] ss:$8 sps:$4 sm:$0xff]  }
 0x104   :  { %1654 = vmatprep.subr.bf16.mxu1 %v3337_v53  ;;  %v3445_v53 = vld [vmem:[#allocation8 + $0x104] ss:$8 sps:$4 sm:$0xff]  }
 0x106   :  { %1616 = vmatpush2.bf16.msra.mxu0 %v3338_v56  ;;  %v3443_v56 = vld [vmem:[#allocation8 + $0x100] ss:$8 sps:$4 sm:$0xff]  }
 0x107   :  { %1655 = vmatpush2.bf16.msra.mxu1 %v3335_v55  ;;  %1617 = vmatprep.subr.bf16.mxu0 %v3346_v58  ;;  %v3412_v55 = vld [vmem:[#allocation8 + $0xb4] ss:$8 sps:$4 sm:$0xff]   ;;  %v3410_v58 = vld [vmem:[#allocation8 + $0xb0] ss:$8 sps:$4 sm:$0xff]  }
 0x108   :  { %1656 = vmatprep.subr.bf16.mxu1 %v3343_v57  ;;  %v3448_v57 = vld [vmem:[#allocation8 + $0x1f4] ss:$8 sps:$4 sm:$0xff]  }
 0x10a   :  { %1618 = vmatpush2.bf16.msra.mxu0 %v3344_v60  ;;  %v3446_v60 = vld [vmem:[#allocation8 + $0x1f0] ss:$8 sps:$4 sm:$0xff]  }
 0x10b   :  { %1657 = vmatpush2.bf16.msra.mxu1 %v3341_v59  ;;  %1619 = vmatprep.subr.bf16.mxu0 %v3352_v62  ;;  %v3415_v59 = vld [vmem:[#allocation8 + $0xa4] ss:$8 sps:$4 sm:$0xff]   ;;  %v3418_v62 = vld [vmem:[#allocation8 + $0x94] ss:$8 sps:$4 sm:$0xff]  }
 0x10c   :  { %1658 = vmatprep.subr.bf16.mxu1 %v3349_v61  ;;  %v3413_v61 = vld [vmem:[#allocation8 + $0xa0] ss:$8 sps:$4 sm:$0xff]  }
 0x10e   :  { %1620 = vmatpush2.bf16.msra.mxu0 %v3350_v0  ;;  %v3421_v0 = vld [vmem:[#allocation8 + $0x84] ss:$8 sps:$4 sm:$0xff]  }
 0x10f   :  { %1659 = vmatpush2.bf16.msra.mxu1 %v3347_v63  ;;  %1621 = vmatprep.subr.bf16.mxu0 %v3358_v2  ;;  %v3416_v63 = vld [vmem:[#allocation8 + $0x90] ss:$8 sps:$4 sm:$0xff]   ;;  %v3451_v2 = vld [vmem:[#allocation8 + $0x1e4] ss:$8 sps:$4 sm:$0xff]  }
 0x110   :  { %1660 = vmatprep.subr.bf16.mxu1 %v3355_v1  ;;  %v3419_v1 = vld [vmem:[#allocation8 + $0x80] ss:$8 sps:$4 sm:$0xff]  }
 0x112   :  { %1622 = vmatpush2.bf16.msra.mxu0 %v3356_v5  ;;  %v3454_v5 = vld [vmem:[#allocation8 + $0x1d4] ss:$8 sps:$4 sm:$0xff]  }
 0x113   :  { %1661 = vmatpush2.bf16.msra.mxu1 %v3353_v3  ;;  %1623 = vmatprep.subr.bf16.mxu0 %v3364_v7  ;;  %v3449_v3 = vld [vmem:[#allocation8 + $0x1e0] ss:$8 sps:$4 sm:$0xff]   ;;  %v3457_v7 = vld [vmem:[#allocation8 + $0x1c4] ss:$8 sps:$4 sm:$0xff]  }
 0x114   :  { %1662 = vmatprep.subr.bf16.mxu1 %v3361_v6  ;;  %v3452_v6 = vld [vmem:[#allocation8 + $0x1d0] ss:$8 sps:$4 sm:$0xff]  }
 0x116   :  { %1624 = vmatpush2.bf16.msra.mxu0 %v3362_v10  ;;  %v3460_v10 = vld [vmem:[#allocation8 + $0x1b4] ss:$8 sps:$4 sm:$0xff]  }
 0x117   :  { %1663 = vmatpush2.bf16.msra.mxu1 %v3359_v8  ;;  %2130 = vmatprep.subr.bf16.mxu0 %v3376_v13  ;;  %v3455_v8 = vld [vmem:[#allocation8 + $0x1c0] ss:$8 sps:$4 sm:$0xff]   ;;  %v3463_v13 = vld [vmem:[#allocation8 + $0x1a4] ss:$8 sps:$4 sm:$0xff]  }
 0x118   :  { %1664 = vmatprep.subr.bf16.mxu1 %v3367_v12  ;;  %v3458_v12 = vld [vmem:[#allocation8 + $0x1b0] ss:$8 sps:$4 sm:$0xff]  }
 0x119   :  { %1626 = vmatmul.mubr.bf16.vlgmr.msra.gmra.mxu0 %v3502_v19  ;;  %v3467_v19 = vld [vmem:[#allocation8 + $0x180] ss:$8 sps:$4 sm:$0xff]  }
 0x11a   :  { %2131 = vmatpush1.bf16.msra.mxu0 %v3374_v16  ;;  %v3466_v16 = vld [vmem:[#allocation8 + $0x194] ss:$8 sps:$4 sm:$0xff]  }
 0x11b   :  { %1665 = vmatpush2.bf16.msra.mxu1 %v3365_v15  ;;  %2132 = vmatprep.subr.bf16.mxu0 %v3379_v18  ;;  %v3461_v15 = vld [vmem:[#allocation8 + $0x1a0] ss:$8 sps:$4 sm:$0xff]   ;;  %v3469_v18 = vld [vmem:[#allocation8 + $0x184] ss:$8 sps:$4 sm:$0xff]  }
 0x11c   :  { %1666 = vmatprep.subr.bf16.mxu1 %v3370_v17  ;;  %v3464_v17 = vld [vmem:[#allocation8 + $0x190] ss:$8 sps:$4 sm:$0xff]  }
 0x11e   :  { %2133 = vmatpush1.bf16.msra.mxu0 %v3377_v21  ;;  %v339_v21 = vlaneseq }
 0x11f   :  { %1667 = vmatpush2.bf16.msra.mxu1 %v3368_v20  ;;  %2134 = vmatprep.subr.bf16.mxu0 %v3382_v23 }
 0x120   :  { %1693 = vmatprep.subr.bf16.mxu1 %v3373_v22  ;;  %v3810_v23 = vshrl.u32 %v339_v21, 7 }
 0x122   :  { %1669 = vmatmul.mubr.bf16.vlgmr.msra.gmra.mxu1 %v3800_v9  ;;  %2135 = vmatpush1.bf16.msra.mxu0 %v3380_v25  ;;  %v3394_v9 = vld [vmem:[#allocation8 + $0x14] ss:$8 sps:$4 sm:$0xff]  }
 0x123   :  { %1694 = vmatpush1.bf16.msra.mxu1 %v3371_v24  ;;  %1711 = vmatprep.mubr.bf16.mxu1 %v3688_v11  ;;  %v3425_v11 = vld [vmem:[#allocation8 + $0x160] ss:$8 sps:$4 sm:$0xff]  }
 0x124   :  { %2136 = vmatprep.subr.bf16.mxu0 %v3385_v26  ;;  %2173 = vmatprep.subr.bf16.mxu1 %v3424_v31  ;;  %v345_v26 = vsub.s32 1, %v3810_v23 }
 0x126   :  { %2137 = vmatpush1.bf16.msra.mxu0 %v3383_v27  ;;  %v341_v27 = vsub.s32 0, %v3810_v23 }
 0x127   :  { %2138 = vmatprep.subr.bf16.mxu0 %v3388_v28 }
 0x12a   :  { %2862 = vmatmul.mubr.msk.bf16.vlgmr.msra.gmra.mxu1 %vm1374_vm0, %v3792_v14  ;;  %2139 = vmatpush1.bf16.msra.mxu0 %v3386_v29  ;;  %v3433_v14 = vld [vmem:[#allocation8 + $0x144] ss:$8 sps:$4 sm:$0xff]   ;;  %v337_v29 = vld [vmem:[#allocation7] sm:$0xf] }
 0x12b   :  { %2140 = vmatprep.subr.bf16.mxu0 %v3391_v51  ;;  %2174 = vmatpush1.bf16.msra.mxu1 %v3422_v30  ;;  %v346_v30 = vrot.slane %v337_v29, %v345_v26  ;;  %v342_v31 = vrot.slane %v337_v29, %v341_v27 }
 0x12c   :  { %2175 = vmatprep.subr.bf16.mxu1 %v3427_v4 }
 0x12e   :  { %2141 = vmatpush1.bf16.msra.mxu0 %v3389_v32 }
 0x12f   :  { %2142 = vmatprep.subr.bf16.mxu0 %v3394_v9  ;;  %2176 = vmatpush1.bf16.msra.mxu1 %v3425_v11 }
 0x130   :  { %2177 = vmatprep.subr.bf16.mxu1 %v3430_v34 }
 0x132   :  { %2143 = vmatpush1.bf16.msra.mxu0 %v3392_v35 }
 0x133   :  { %2144 = vmatprep.subr.bf16.mxu0 %v3397_v36  ;;  %2178 = vmatpush1.bf16.msra.mxu1 %v3428_v37 }
 0x134   :  { %2179 = vmatprep.subr.bf16.mxu1 %v3433_v14 }
 0x136   :  { %2145 = vmatpush1.bf16.msra.mxu0 %v3395_v33 }
 0x137   :  { %2146 = vmatprep.subr.bf16.mxu0 %v3400_v38  ;;  %2180 = vmatpush1.bf16.msra.mxu1 %v3431_v39 }
 0x138   :  { %2181 = vmatprep.subr.bf16.mxu1 %v3436_v40 }
 0x13a   :  { %2147 = vmatpush2.bf16.msra.mxu0 %v3398_v41 }
 0x13b   :  { %2148 = vmatprep.subr.bf16.mxu0 %v3403_v42  ;;  %2182 = vmatpush1.bf16.msra.mxu1 %v3434_v43 }
 0x13c   :  { %2183 = vmatprep.subr.bf16.mxu1 %v3439_v44 }
 0x13e   :  { %2149 = vmatpush2.bf16.msra.mxu0 %v3401_v45 }
 0x13f   :  { %2150 = vmatprep.subr.bf16.mxu0 %v3406_v46  ;;  %2184 = vmatpush1.bf16.msra.mxu1 %v3437_v47 }
 0x140   :  { %2185 = vmatprep.subr.bf16.mxu1 %v3442_v48 }
 0x142   :  { %2151 = vmatpush2.bf16.msra.mxu0 %v3404_v49 }
 0x143   :  { %2152 = vmatprep.subr.bf16.mxu0 %v3409_v50  ;;  %2186 = vmatpush1.bf16.msra.mxu1 %v3440_v52 }
 0x144   :  { %2187 = vmatprep.subr.bf16.mxu1 %v3445_v53 }
 0x146   :  { %2153 = vmatpush2.bf16.msra.mxu0 %v3407_v54 }
 0x147   :  { %2154 = vmatprep.subr.bf16.mxu0 %v3412_v55  ;;  %2188 = vmatpush1.bf16.msra.mxu1 %v3443_v56 }
 0x148   :  { %2189 = vmatprep.subr.bf16.mxu1 %v3448_v57 }
 0x14a   :  { %2155 = vmatpush2.bf16.msra.mxu0 %v3410_v58 }
 0x14b   :  { %2156 = vmatprep.subr.bf16.mxu0 %v3415_v59  ;;  %2190 = vmatpush2.bf16.msra.mxu1 %v3446_v60 }
 0x14c   :  { %2191 = vmatprep.subr.bf16.mxu1 %v3451_v2  ;;  %v353_v2 = vsub.s32 3, %v3810_v23 }
 0x14e   :  { %2157 = vmatpush2.bf16.msra.mxu0 %v3413_v61 }
 0x14f   :  { %2158 = vmatprep.subr.bf16.mxu0 %v3418_v62  ;;  %2192 = vmatpush2.bf16.msra.mxu1 %v3449_v3  ;;  %v349_v3 = vsub.s32 2, %v3810_v23 }
 0x150   :  { %2193 = vmatprep.subr.bf16.mxu1 %v3454_v5 }
 0x152   :  { %2159 = vmatpush2.bf16.msra.mxu0 %v3416_v63 }
 0x153   :  { %2160 = vmatprep.subr.bf16.mxu0 %v3421_v0  ;;  %2194 = vmatpush2.bf16.msra.mxu1 %v3452_v6 }
 0x154   :  { %2195 = vmatprep.subr.bf16.mxu1 %v3457_v7 }
 0x156   :  { %2161 = vmatpush2.bf16.msra.mxu0 %v3419_v1 }
 0x157   :  { %2196 = vmatpush2.bf16.msra.mxu1 %v3455_v8  ;;  %v354_v8 = vrot.slane %v337_v29, %v353_v2 }
 0x158   :  { %2197 = vmatprep.subr.bf16.mxu1 %v3460_v10  ;;  %v350_v10 = vrot.slane %v337_v29, %v349_v3 }
 0x159   :  { %v1412_v24 = vpop.f32.mrf.mxu0 }
 0x15a   :  { %v1455_v20 = vpop.f32.mrf.mxu1  ;;  %v1413_v11 = vadd.f32 %v1412_v24, %v342_v31 }
 0x15b   :  { %2198 = vmatpush2.bf16.msra.mxu1 %v3458_v12  ;;  %v1414_v28 = vpop.f32.mrf.mxu0 }
 0x15c   :  { %2199 = vmatprep.subr.bf16.mxu1 %v3463_v13  ;;  %v1457_v22 = vpop.f32.mrf.mxu1  ;;  %v1415_v9 = vadd.f32 %v1414_v28, %v346_v30  ;;  %v1456_v38 = vadd.f32 %v1455_v20, %v1413_v11 }
 0x15d   :  { %v1416_v4 = vpop.f32.mrf.mxu0 }
 0x15e   :  { %v1459_v25 = vpop.f32.mrf.mxu1  ;;  %v1417_v35 = vadd.f32 %v1416_v4, %v342_v31  ;;  %v1458_v14 = vadd.f32 %v1457_v22, %v1415_v9 }
 0x15f   :  { %2200 = vmatpush2.bf16.msra.mxu1 %v3461_v15  ;;  %v1418_v34 = vpop.f32.mrf.mxu0 }
 0x160   :  { %2201 = vmatprep.subr.bf16.mxu1 %v3466_v16  ;;  %v1461_v51 = vpop.f32.mrf.mxu1  ;;  %v1419_v33 = vadd.f32 %v1418_v34, %v346_v30  ;;  %v1460_v40 = vadd.f32 %v1459_v25, %v1417_v35 }
 0x162   :  { %v1541_v32 = vpop.f32.mrf.mxu1  ;;  %v1462_v45 = vadd.f32 %v1461_v51, %v1419_v33  ;;  %v3472_v33 = vld [vmem:[#allocation10 + $0x70] sm:$0xff]  }
 0x163   :  { %2202 = vmatpush2.bf16.msra.mxu1 %v3464_v17 }
 0x164   :  { %2203 = vmatprep.subr.bf16.mxu1 %v3469_v18  ;;  %v1543_v36 = vpop.f32.mrf.mxu1 }
 0x166   :  { %v1545_v42 = vpop.f32.mrf.mxu1 }
 0x167   :  { %2204 = vmatpush2.bf16.msra.mxu1 %v3467_v19 }
 0x168   :  { %v1547_v52 = vpop.f32.mrf.mxu1 }
 0x199   :  { %v1498_v37 = vpop.f32.mrf.mxu0 }
 0x19a   :  { %v1499_v43 = vadd.f32 %v1498_v37, %v1456_v38  ;;  %v3470_v37 = vld [vmem:[#allocation10 + $0x78] sm:$0xff]  }
 0x19b   :  { %v1500_v39 = vpop.f32.mrf.mxu0  ;;  %2971 = vmatprep.subr.bf16.mxu0 %v3470_v37  ;;  %v2927_v37 = vld [vmem:[%s3866_s6] ss:$0 sm:$0xff] }
 0x19c   :  { %v1501_v41 = vadd.f32 %v1500_v39, %v1458_v14  ;;  %v1542_v53 = vadd.f32 %v1541_v32, %v1499_v43  ;;  %v3471_v14 = vld [vmem:[#allocation10 + $0x38] sm:$0xff]  }
 0x19d   :  { %v1502_v44 = vpop.f32.mrf.mxu0 }
 0x19e   :  { %v1503_v46 = vadd.f32 %v1502_v44, %v1460_v40  ;;  %v1544_v48 = vadd.f32 %v1543_v36, %v1501_v41  ;;  %v1722_v58 = vmax.f32 %v1542_v53, 0.0  ;;  %v3474_v44 = vld [vmem:[#allocation10 + $0x68] sm:$0xff]   ;;  %v3481_v53 = vld [vmem:[#allocation10 + $0x10] sm:$0xff]  }
 0x19f   :  { %v1504_v47 = vpop.f32.mrf.mxu0 }
 0x1a0   :  { %v1546_v49 = vadd.f32 %v1545_v42, %v1503_v46  ;;  %v1505_v50 = vadd.f32 %v1504_v47, %v1462_v45  ;;  %v1723_v56 = vmax.f32 %v1544_v48, 0.0  ;;  %v3473_v42 = vld [vmem:[#allocation10 + $0x30] sm:$0xff]   ;;  %v3475_v46 = vld [vmem:[#allocation10 + $0x28] sm:$0xff]   ;;  %v3476_v47 = vld [vmem:[#allocation10 + $0x60] sm:$0xff]  }
 0x1a1   :  { %v3477_v48 = vld [vmem:[#allocation10 + $0x20] sm:$0xff]  }
 0x1a2   :  { %v1548_v54 = vadd.f32 %v1547_v52, %v1505_v50  ;;  %v1726_v55 = vmax.f32 %v1546_v49, 0.0  ;;  %v1584_v61 = vpop.f32.mrf.mxu1  ;;  %v3478_v49 = vld [vmem:[#allocation10 + $0x58] sm:$0xff]   ;;  %v3480_v52 = vld [vmem:[#allocation10 + $0x50] sm:$0xff]  }
 0x1a3   :  { %v1585_v18 = vadd.f32 %v1584_v61, %v350_v10  ;;  %v3479_v50 = vld [vmem:[#allocation10 + $0x18] sm:$0xff]   ;;  %v3488_v61 = vld [vmem:[#allocation11 + $0x28] sm:$0xff]  }
 0x1a4   :  { %v1727_v57 = vmax.f32 %v1548_v54, 0.0  ;;  %v1730_v60 = vpack.c.bf16 %v1726_v55, %v1722_v58  ;;  %v1586_v62 = vpop.f32.mrf.mxu1  ;;  %v3482_v54 = vld [vmem:[#allocation10 + $0x48] sm:$0xff]   ;;  %v3486_v58 = vld [vmem:[#allocation11 + $0x38] sm:$0xff]  }
 0x1a5   :  { %v1587_v16 = vadd.f32 %v1586_v62, %v354_v8  ;;  %v3483_v55 = vld [vmem:[#allocation10 + $0x8] sm:$0xff]   ;;  %v3489_v62 = vld [vmem:[#allocation11 + $0x20] sm:$0xff]  }
 0x1a6   :  { %v1731_v59 = vpack.c.bf16 %v1727_v57, %v1723_v56  ;;  %v1588_v63 = vpop.f32.mrf.mxu1  ;;  %v3484_v56 = vld [vmem:[#allocation10 + $0x40] sm:$0xff]  }
 0x1a7   :  { %v1589_v17 = vadd.f32 %v1588_v63, %v350_v10  ;;  %v3485_v57 = vld [vmem:[#allocation10] sm:$0xff]  }
 0x1a8   :  { %2162 = vmatprep.mubr.bf16.mxu0 %v1731_v59  ;;  %v1590_v1 = vpop.f32.mrf.mxu1  ;;  %v3689_v59 = vmov 0.0  }
 0x1a9   :  { %2163 = vmatmul.mubr.bf16.vlgmr.msra.gmra.mxu0 %v1730_v60  ;;  %v1591_v21 = vadd.f32 %v1590_v1, %v354_v8  ;;  %3011 = vmatprep.subr.bf16.mxu1 %v3689_v59  ;;  %v3487_v60 = vld [vmem:[#allocation11 + $0x30] sm:$0xff]   ;;  %v1798_v1 = vld [vmem:[%s3864_s4] sm:$0x3] }
 0x1aa   :  { %2972 = vmatpush3.bf16.msra.mxu0 %v3471_v14  ;;  %v1807_v3 = vrot.slane %v1798_v1, %v345_v26 }
 0x1ab   :  { %2973 = vmatprep.subr.bf16.mxu0 %v3472_v33 }
 0x1ae   :  { %2974 = vmatpush3.bf16.msra.mxu0 %v3473_v42 }
 0x1af   :  { %2975 = vmatprep.subr.bf16.mxu0 %v3474_v44  ;;  %v3499_v44 = vld [vmem:[#allocation13 + $0x10] sm:$0xff]  }
 0x1b2   :  { %2976 = vmatpush3.bf16.msra.mxu0 %v3475_v46  ;;  %v3501_v46 = vld [vmem:[#allocation13] sm:$0xff]  }
 0x1b3   :  { %2977 = vmatprep.subr.bf16.mxu0 %v3476_v47  ;;  %v2944_v47 = vld [vmem:[%s3868_s8] ss:$0 sm:$0xff]  ;;  %s3643_s8 = scalar_lea.vmem %s2644_s22, 128 }
 0x1b4   :  { %p3644_p7 = scmp.ne.s32.totalorder %s2644_s22, %s3643_s8  ;;  %p3649_p9 = scmp.lt.s32.totalorder %s3643_s8, %s3643_s8 }
 0x1b6   :  { %2978 = vmatpush3.bf16.msra.mxu0 %v3477_v48  ;;  %p3650_p10 = por %p3649_p9, %p3648_p8 }
 0x1b7   :  { %2979 = vmatprep.subr.bf16.mxu0 %v3478_v49 }
 0x1b8   :  { %p3651_p11 = pnand %p3650_p10, %p3644_p7 }
 0x1ba   :  { %2980 = vmatpush3.bf16.msra.mxu0 %v3479_v50 }
 0x1bb   :  { %2981 = vmatprep.subr.bf16.mxu0 %v3480_v52 }
 0x1be   :  { %2982 = vmatpush3.bf16.msra.mxu0 %v3481_v53 }
 0x1bf   :  { %2983 = vmatprep.subr.bf16.mxu0 %v3482_v54 }
 0x1c2   :  { %2984 = vmatpush3.bf16.msra.mxu0 %v3483_v55 }
 0x1c3   :  { %2985 = vmatprep.subr.bf16.mxu0 %v3484_v56 }
 0x1c6   :  { %2986 = vmatpush3.bf16.msra.mxu0 %v3485_v57 }
 0x1c7   :  { %3031 = vmatprep.subr.bf16.mxu0 %v3689_v59 }
 0x1d9   :  { %v1627_v0 = vpop.f32.mrf.mxu0 }
 0x1da   :  { %v1628_v25 = vadd.f32 %v1627_v0, %v1585_v18 }
 0x1db   :  { %v1629_v5 = vpop.f32.mrf.mxu0 }
 0x1dc   :  { %v1630_v22 = vadd.f32 %v1629_v5, %v1587_v16  ;;  %v1803_v5 = vrot.slane %v1798_v1, %v341_v27  ;;  %v3490_v27 = vld [vmem:[#allocation11 + $0x18] sm:$0xff]  }
 0x1dd   :  { %v1631_v12 = vpop.f32.mrf.mxu0 }
 0x1de   :  { %v1632_v24 = vadd.f32 %v1631_v12, %v1589_v17 }
 0x1df   :  { %v1633_v19 = vpop.f32.mrf.mxu0 }
 0x1e0   :  { %v1634_v51 = vadd.f32 %v1633_v19, %v1591_v21 }
 0x1e2   :  { %v1670_v6 = vpop.f32.mrf.mxu1 }
 0x1e3   :  { %v1671_v4 = vadd.f32 %v1670_v6, %v1628_v25 }
 0x1e4   :  { %v1672_v7 = vpop.f32.mrf.mxu1 }
 0x1e5   :  { %v1673_v30 = vadd.f32 %v1672_v7, %v1630_v22 }
 0x1e6   :  { %v1674_v13 = vpop.f32.mrf.mxu1 }
 0x1e7   :  { %v1675_v31 = vadd.f32 %v1674_v13, %v1632_v24 }
 0x1e8   :  { %v1676_v15 = vpop.f32.mrf.mxu1 }
 0x1e9   :  { %v1677_v9 = vadd.f32 %v1676_v15, %v1634_v51  ;;  %v3491_v51 = vld [vmem:[#allocation11 + $0x10] sm:$0xff]  }
 0x1ea   :  { %v1713_v20 = vpop.f32.mrf.mxu1 }
 0x1eb   :  { %v1714_v34 = vadd.f32 %v1713_v20, %v1671_v4  ;;  %v3494_v4 = vld [vmem:[#allocation13 + $0x38] sm:$0xff]  }
 0x1ec   :  { %v1715_v28 = vpop.f32.mrf.mxu1 }
 0x1ed   :  { %v1716_v29 = vadd.f32 %v1715_v28, %v1673_v30  ;;  %v1724_v41 = vmax.f32 %v1714_v34, 0.0  ;;  %v3492_v30 = vld [vmem:[#allocation11 + $0x8] sm:$0xff]  }
 0x1ee   :  { %v1717_v32 = vpop.f32.mrf.mxu1 }
 0x1ef   :  { %v1718_v11 = vadd.f32 %v1717_v32, %v1675_v31  ;;  %v1725_v39 = vmax.f32 %v1716_v29, 0.0  ;;  %v3493_v31 = vld [vmem:[#allocation11] sm:$0xff]   ;;  %v3495_v32 = vld [vmem:[#allocation13 + $0x30] sm:$0xff]  }
 0x1f0   :  { %v1719_v35 = vpop.f32.mrf.mxu1  ;;  %v3497_v29 = vld [vmem:[#allocation13 + $0x20] sm:$0xff]  }
 0x1f1   :  { %v1720_v36 = vadd.f32 %v1719_v35, %v1677_v9  ;;  %v1728_v38 = vmax.f32 %v1718_v11, 0.0  ;;  %v3496_v9 = vld [vmem:[#allocation13 + $0x28] sm:$0xff]   ;;  %v3498_v11 = vld [vmem:[#allocation13 + $0x18] sm:$0xff]  }
 0x1f3   :  { %v1729_v40 = vmax.f32 %v1720_v36, 0.0  ;;  %v1732_v45 = vpack.c.bf16 %v1728_v38, %v1724_v41 }
 0x1f5   :  { %v1733_v43 = vpack.c.bf16 %v1729_v40, %v1725_v39 }
 0x1f7   :  { %2205 = vmatprep.mubr.bf16.mxu1 %v1733_v43 }
 0x1f8   :  { %2206 = vmatmul.mubr.bf16.vlgmr.msra.gmra.mxu1 %v1732_v45  ;;  %v3500_v45 = vld [vmem:[#allocation13 + $0x8] sm:$0xff]  }
 0x1f9   :  { %3012 = vmatpush3.bf16.msra.mxu1 %v3486_v58  ;;  %3027 = vmatprep.mubr.msk.bf16.mxu1 %vm3690_vm1, %v3689_v59 }
 0x1fa   :  { %3013 = vmatprep.subr.bf16.mxu1 %v3689_v59 }
 0x1fd   :  { %3014 = vmatpush3.bf16.msra.mxu1 %v3487_v60 }
 0x1fe   :  { %3015 = vmatprep.subr.bf16.mxu1 %v3689_v59 }
 0x201   :  { %3016 = vmatpush3.bf16.msra.mxu1 %v3488_v61 }
 0x202   :  { %3017 = vmatprep.subr.bf16.mxu1 %v3689_v59 }
 0x205   :  { %3018 = vmatpush3.bf16.msra.mxu1 %v3489_v62 }
 0x206   :  { %3019 = vmatprep.subr.bf16.mxu1 %v3689_v59 }
 0x209   :  { %3020 = vmatpush3.bf16.msra.mxu1 %v3490_v27 }
 0x20a   :  { %3021 = vmatprep.subr.bf16.mxu1 %v3689_v59 }
 0x20d   :  { %3022 = vmatpush3.bf16.msra.mxu1 %v3491_v51 }
 0x20e   :  { %3023 = vmatprep.subr.bf16.mxu1 %v3689_v59 }
 0x211   :  { %3024 = vmatpush3.bf16.msra.mxu1 %v3492_v30 }
 0x212   :  { %3025 = vmatprep.subr.bf16.mxu1 %v3689_v59 }
 0x215   :  { %3026 = vmatpush3.bf16.msra.mxu1 %v3493_v31 }
 0x269   :  { %v2164_v63 = vpop.f32.mrf.mxu0 }
 0x26a   :  { %v2165_v13 = vadd.f32 %v2164_v63, %v1803_v5 }
 0x26b   :  { %v2166_v0 = vpop.f32.mrf.mxu0 }
 0x26c   :  { %v2167_v10 = vadd.f32 %v2166_v0, %v1807_v3 }
 0x26d   :  { %v2168_v2 = vpop.f32.mrf.mxu0 }
 0x26e   :  { %v2169_v12 = vadd.f32 %v2168_v2, %v1803_v5 }
 0x26f   :  { %v2170_v7 = vpop.f32.mrf.mxu0 }
 0x270   :  { %v2171_v16 = vadd.f32 %v2170_v7, %v1807_v3 }
 0x2b8   :  { %v2207_v6 = vpop.f32.mrf.mxu1 }
 0x2b9   :  { %v2208_v19 = vadd.f32 %v2207_v6, %v2165_v13 }
 0x2ba   :  { %v2209_v8 = vpop.f32.mrf.mxu1 }
 0x2bb   :  { %v2210_v17 = vadd.f32 %v2209_v8, %v2167_v10  ;;  %v2216_v26 = vmax.f32 %v2208_v19, 0.0 }
 0x2bc   :  { %v2211_v15 = vpop.f32.mrf.mxu1 }
 0x2bd   :  { %v2212_v18 = vadd.f32 %v2211_v15, %v2169_v12  ;;  %v2217_v24 = vmax.f32 %v2210_v17, 0.0 }
 0x2be   :  { %v2213_v20 = vpop.f32.mrf.mxu1 }
 0x2bf   :  { %v2214_v21 = vadd.f32 %v2213_v20, %v2171_v16  ;;  %v2218_v22 = vmax.f32 %v2212_v18, 0.0 }
 0x2c1   :  { %v2219_v25 = vmax.f32 %v2214_v21, 0.0  ;;  %v2220_v23 = vpack.c.bf16 %v2218_v22, %v2216_v26 }
 0x2c3   :  { %v2221_v28 = vpack.c.bf16 %v2219_v25, %v2217_v24 }
 0x2c5   :  { %2389 = vmatprep.mubr.bf16.mxu0 %v2221_v28 }
 0x2c6   :  { %2390 = vmatmul.mubr.bf16.vlgmr.msra.gmra.mxu0 %v2220_v23 }
 0x2c7   :  { %3047 = vmatprep.mubr.msk.bf16.mxu0 %vm3690_vm1, %v3689_v59  ;;  %3032 = vmatpush3.bf16.msra.mxu0 %v3494_v4 }
 0x2c8   :  { %3033 = vmatprep.subr.bf16.mxu0 %v3689_v59 }
 0x2cb   :  { %3034 = vmatpush3.bf16.msra.mxu0 %v3495_v32 }
 0x2cc   :  { %3035 = vmatprep.subr.bf16.mxu0 %v3689_v59 }
 0x2cf   :  { %3036 = vmatpush3.bf16.msra.mxu0 %v3496_v9 }
 0x2d0   :  { %3037 = vmatprep.subr.bf16.mxu0 %v3689_v59 }
 0x2d3   :  { %3038 = vmatpush3.bf16.msra.mxu0 %v3497_v29 }
 0x2d4   :  { %3039 = vmatprep.subr.bf16.mxu0 %v3689_v59 }
 0x2d7   :  { %3040 = vmatpush3.bf16.msra.mxu0 %v3498_v11 }
 0x2d8   :  { %3041 = vmatprep.subr.bf16.mxu0 %v3689_v59 }
 0x2db   :  { %3042 = vmatpush3.bf16.msra.mxu0 %v3499_v44 }
 0x2dc   :  { %3043 = vmatprep.subr.bf16.mxu0 %v3689_v59 }
 0x2df   :  { %3044 = vmatpush3.bf16.msra.mxu0 %v3500_v45 }
 0x2e0   :  { %3045 = vmatprep.subr.bf16.mxu0 %v3689_v59  ;;  %v2953_v59 = vld [vmem:[%s3870_s10] ss:$0 sm:$0xff] }
 0x2e3   :  { %3046 = vmatpush3.bf16.msra.mxu0 %v3501_v46 }
 0x386   :  { %v2987_v34 = vpop.f32.mrf.mxu0 }
 0x388   :  { %v2988_v35 = vpop.f32.mrf.mxu0 }
 0x389   :  { %v2989_v36 = vadd.f32 %v2988_v35, %v2987_v34 }
 0x38a   :  { %v2990_v14 = vpop.f32.mrf.mxu0 }
 0x38b   :  { %v2392_v38 = vadd.f32 %v2989_v36, %v2927_v37 }
 0x38c   :  { %v2991_v33 = vpop.f32.mrf.mxu0 }
 0x38d   :  { %v2992_v39 = vadd.f32 %v2991_v33, %v2990_v14  ;;  %v2398_v41 = vmax.f32 %v2392_v38, 0.0 }
 0x38f   :  { %v2395_v40 = vadd.f32 %v2992_v39, %v2927_v37 }
 0x391   :  { %v2399_v42 = vmax.f32 %v2395_v40, 0.0 }
 0x393   :  { %v2400_v43 = vpack.c.bf16 %v2399_v42, %v2398_v41 }
 0x395   :  { %3028 = vmatmul.mubr.bf16.vlgmr.msra.gmra.mxu1 %v2400_v43 }
 0x455   :  { %v2506_v48 = vpop.f32.mrf.mxu1 }
 0x456   :  { %v2507_v50 = vadd.f32 %v2944_v47, %v2506_v48 }
 0x457   :  { %v3029_v49 = vpop.f32.mrf.mxu1 }
 0x458   :  { %v2513_v55 = vmax.f32 %v2507_v50, 0.0 }
 0x459   :  { %v2509_v52 = vpop.f32.mrf.mxu1 }
 0x45a   :  { %v2510_v53 = vadd.f32 %v2944_v47, %v2509_v52 }
 0x45b   :  { %v3030_v54 = vpop.f32.mrf.mxu1 }
 0x45c   :  { %v2514_v56 = vmax.f32 %v2510_v53, 0.0 }
 0x45e   :  { %v2515_v57 = vpack.c.bf16 %v2514_v56, %v2513_v55 }
 0x460   :  { %3048 = vmatmul.mubr.bf16.vlgmr.msra.gmra.mxu0 %v2515_v57 }
 0x520   :  { %v2621_v58 = vpop.f32.mrf.mxu0 }
 0x521   :  { %v2622_v62 = vadd.f32 %v2953_v59, %v2621_v58 }
 0x522   :  { %v3049_v60 = vpop.f32.mrf.mxu0 }
 0x524   :  { %v2624_v61 = vpop.f32.mrf.mxu0 }
 0x525   :  { %v2625_v63 = vadd.f32 %v2953_v59, %v2624_v61 }
 0x526   :  { %v3050_v0 = vpop.f32.mrf.mxu0 }
 0x527   :  { %v2969_v1 = vpack.c.bf16 %v2625_v63, %v2622_v62 }
 0x529   :  { %2970 = vst [vmem:[#allocation14] sm:$0xff] %v2969_v1  }
 0x52a   :  { %3654 = shalt.err (!%p3651_p11)
}
 0x52b   :  { %2649 = dma.vmem_to_hbm [thread:$0]  %s2644_s22, 128, %s3871_s11, [#allocation4], %s3681_s16, %s3681_s16, %s3682_s17  }
 0x52c   :  { %3671 = dma.done.wait [#allocation4], 128  }
 0x52d   :  { %3672 = vsyncadd [#allocation4], 4294967168 }
 0x52e   :  { %2653 = vsyncpa [#allocation3], 1 }
 0x52f   :  { %2654 = vsyncpa [#allocation6], 1 }
 0x530   :  { %2655 = vsyncpa [#allocation9], 1 }
 0x531   :  { %2656 = vsyncpa [#allocation12], 1 }
 0x532   :  { %2657 = vsyncpa [#allocation4], 1 }

</bundles_post_ra>
